<compile_context>
chip_gen: v7x
topology: tpu7x:2x2x1
jax: 0.10.0
libtpu: 0.0.40
codegen_flags: <defaults>
</compile_context>

<pallas_src>
import jax
import jax.numpy as jnp
import numpy as np
from jax import lax
from jax.experimental import pallas as pl
from jax.experimental.pallas import tpu as pltpu


def _round_up(x, m):
    return (x + m - 1) // m * m


def encoder_gru_kernel(x_ref, wih_ref, whh_ref, bih_ref, bhhn_ref,
                       out_ref, hid_ref, gi_ref, hist_ref):
    """Single-layer GRU over one batch block, whole sequence in one grid step.

    x_ref    : (T, BB, HP)    time-major embedded inputs for this batch block
    wih_ref  : (HP, 3*HP)     W_ih^T, gate order [r | z | n], 128-lane gate blocks
    whh_ref  : (HP, 3*HP)     W_hh^T, same layout
    bih_ref  : (1, 3*HP)      b_ih with b_hh[r,z] pre-folded in (f32)
    bhhn_ref : (1, HP)        b_hh[n] (must stay inside the r*(.) term)
    out_ref  : (BB, T*HP)     per-step hidden states, batch-first & lane-dense
    hid_ref  : (BB, HP)       final hidden state
    gi_ref   : (T*BB, 3*HP)   f32 scratch: hoisted input projection
    hist_ref : (T, BB, HP)    f32 scratch: per-step hidden states (time-major)
    """
    T, BB, HP = x_ref.shape

    # Hoisted input projection for the whole sequence: one (T*BB, HP) x (HP, 3HP)
    # MXU matmul, staged in explicit VMEM scratch so it never competes for vregs
    # with the serial recurrence.  The reshape only merges tile-aligned leading
    # dims (BB % 8 == 0), so it is a layout no-op.
    gi_ref[...] = (jnp.dot(x_ref[...].reshape(T * BB, HP), wih_ref[...],
                           preferred_element_type=jnp.float32)
                   + bih_ref[...])

    w_hh = whh_ref[...]
    # Hoist the n-gate bias broadcast out of the loop (JAX does not CSE
    # broadcast_in_dim; an in-loop broadcast would be emitted T times).
    b_n = jnp.broadcast_to(bhhn_ref[...], (BB, HP))

    def step(t, h):
        row = pl.multiple_of(t * BB, BB)                              # 8-aligned
        gi = gi_ref[pl.ds(row, BB), :]                                # (BB, 3HP)
        gh = jnp.dot(h.astype(w_hh.dtype), w_hh,
                     preferred_element_type=jnp.float32)              # (BB, 3HP)
        r = jax.nn.sigmoid(gi[:, :HP] + gh[:, :HP])
        z = jax.nn.sigmoid(gi[:, HP:2 * HP] + gh[:, HP:2 * HP])
        n = jnp.tanh(gi[:, 2 * HP:] + r * (gh[:, 2 * HP:] + b_n))
        h = n + z * (h - n)                  # == (1-z)*n + z*h, one fewer VPU op
        hist_ref[t] = h                      # aligned leading-dim store
        return h

    # fori_loop bounds live ranges at large T; unroll=True keeps LLO scheduler
    # visibility (T=8 here; use a modest unroll factor for much larger T).
    h_last = lax.fori_loop(0, T, step, jnp.zeros((BB, HP), jnp.float32),
                           unroll=True)

    # Relayout time-major history -> batch-first, lane-dense output with static
    # full-(8,128)-tile copies only, so every HBM store of out_ref is an
    # unmasked vst and the wrapper needs no (T,B,H)->(B,T,H) transpose.
    for t in range(T):
        out_ref[:, t * HP:(t + 1) * HP] = hist_ref[t].astype(out_ref.dtype)

    hid_ref[...] = h_last.astype(hid_ref.dtype)


def _pad_gru_weight_t(w, H, HP):
    """(3H, H) torch-layout GRU weight -> (HP, 3*HP) transposed, each gate block
    starting on a 128-lane boundary, zero padding elsewhere."""
    wt = w.T                                                           # (H, 3H)
    blocks = [jnp.pad(wt[:, g * H:(g + 1) * H], ((0, HP - H), (0, HP - H)))
              for g in range(3)]
    return jnp.concatenate(blocks, axis=1)                             # (HP, 3HP)


def _pad_gru_bias(b, H, HP):
    blocks = [jnp.pad(b[g * H:(g + 1) * H], (0, HP - H)) for g in range(3)]
    return jnp.concatenate(blocks).reshape(1, 3 * HP)


def gru_forward(emb_tm, w_ih, w_hh, b_ih, b_hh, *, matmul_dtype=jnp.float32):
    """emb_tm: (T, B, H) float32 time-major embeddings.
    Returns (output (B,T,H), hidden (1,B,H)) matching torch batch_first nn.GRU."""
    T, B, H = emb_tm.shape
    BP = _round_up(B, 8)        # sublane-dense batch
    HP = _round_up(H, 128)      # lane-dense hidden; gate slices hit 128-lane
                                # boundaries, per-step stores are full tiles

    # Padded lanes carry zero weights/biases and h0 == 0, so they stay exactly
    # zero through the recurrence; padded batch rows are junk and sliced off.
    x_p = jnp.pad(emb_tm, ((0, 0), (0, BP - B), (0, HP - H))).astype(matmul_dtype)
    w_ih_p = _pad_gru_weight_t(w_ih, H, HP).astype(matmul_dtype)       # (HP, 3HP)
    w_hh_p = _pad_gru_weight_t(w_hh, H, HP).astype(matmul_dtype)       # (HP, 3HP)
    # Pre-fold biases: r/z gates see b_ih + b_hh as one constant; the n-gate
    # hidden bias must stay inside the r*(.) term, so it is passed separately.
    b_comb = jnp.concatenate([b_ih[:2 * H] + b_hh[:2 * H], b_ih[2 * H:]])
    b_comb_p = _pad_gru_bias(b_comb, H, HP)                            # (1, 3HP)
    b_hh_n_p = jnp.pad(b_hh[2 * H:], (0, HP - H)).reshape(1, HP)       # (1, HP)

    # On v7x (2 TensorCores) split the batch across cores; each block keeps at
    # least 8 sublane rows.  At the toy shape this degenerates to one block.
    NB = 2 if BP >= 16 else 1
    BB = BP // NB

    # VMEM budget sized from actual residency (blocks double-buffered) + headroom.
    itemsize = jnp.dtype(matmul_dtype).itemsize
    in_bytes = (T * BB * HP + 2 * HP * 3 * HP) * itemsize + (3 * HP + HP) * 4
    out_bytes = (BB * T * HP + BB * HP) * 4
    scratch_bytes = (T * BB * 3 * HP + T * BB * HP) * 4
    vmem_limit = int(min(max(2 * (in_bytes + out_bytes) + scratch_bytes + (4 << 20),
                             32 << 20), 64 << 20))

    out_p, hid_p = pl.pallas_call(
        encoder_gru_kernel,
        grid=(NB,),
        in_specs=[
            pl.BlockSpec((T, BB, HP), lambda i: (0, i, 0)),
            pl.BlockSpec((HP, 3 * HP), lambda i: (0, 0)),
            pl.BlockSpec((HP, 3 * HP), lambda i: (0, 0)),
            pl.BlockSpec((1, 3 * HP), lambda i: (0, 0)),
            pl.BlockSpec((1, HP), lambda i: (0, 0)),
        ],
        out_specs=(
            pl.BlockSpec((BB, T * HP), lambda i: (i, 0)),
            pl.BlockSpec((BB, HP), lambda i: (i, 0)),
        ),
        out_shape=(jax.ShapeDtypeStruct((BP, T * HP), jnp.float32),
                   jax.ShapeDtypeStruct((BP, HP), jnp.float32)),
        scratch_shapes=[pltpu.VMEM((T * BB, 3 * HP), jnp.float32),
                        pltpu.VMEM((T, BB, HP), jnp.float32)],
        compiler_params=pltpu.CompilerParams(
            dimension_semantics=("parallel",),
            vmem_limit_bytes=vmem_limit),
    )(x_p, w_ih_p, w_hh_p, b_comb_p, b_hh_n_p)

    output = out_p.reshape(BP, T, HP)[:B, :, :H]    # free reshape + small slice
    hidden = hid_p[:B, :H][None]                    # (1, B, H)
    return output, hidden


@jax.jit
def encoder_forward(x_idx, params):
    """x_idx: (B, T) int32 token ids. Mirrors Encoder.forward in eval mode."""
    # Embedding gather directly in time-major order: transpose the tiny int32
    # index array, not the (B, T, H) activations.
    emb_tm = jnp.take(params["embedding"], x_idx.T, axis=0)           # (T, B, H)
    # TODO(synk): dropout is identity here (eval mode); training-mode dropout
    # would draw a mask with pltpu.prng_seed/prng_random_bits inside the kernel.
    # TODO(synk): at H >= 1024 fuse this gather into the kernel (scalar-prefetch
    # ids + pl.Element row BlockSpec) to avoid an HBM round trip of emb_tm, and
    # pass matmul_dtype=jnp.bfloat16 for the MXU operands on v6e/v7x.
    return gru_forward(emb_tm, params["w_ih"], params["w_hh"],
                       params["b_ih"], params["b_hh"])


def init_params(key, n_input, n_hidden):
    k_emb, k1, k2, k3, k4 = jax.random.split(key, 5)
    bound = 1.0 / np.sqrt(n_hidden)
    return {
        # nn.Embedding default init: N(0, 1)
        "embedding": jax.random.normal(k_emb, (n_input, n_hidden), jnp.float32),
        # nn.GRU default init: U(-1/sqrt(H), 1/sqrt(H)), gate order [r, z, n]
        "w_ih": jax.random.uniform(k1, (3 * n_hidden, n_hidden), jnp.float32, -bound, bound),
        "w_hh": jax.random.uniform(k2, (3 * n_hidden, n_hidden), jnp.float32, -bound, bound),
        "b_ih": jax.random.uniform(k3, (3 * n_hidden,), jnp.float32, -bound, bound),
        "b_hh": jax.random.uniform(k4, (3 * n_hidden,), jnp.float32, -bound, bound),
    }


def reference_forward(x_idx, params):
    """Pure-JAX reference (lax.scan GRU) for correctness checking."""
    emb = jnp.take(params["embedding"], x_idx, axis=0)                 # (B, T, H)
    B, T, H = emb.shape
    w_ih_t, w_hh_t = params["w_ih"].T, params["w_hh"].T
    b_ih, b_hh = params["b_ih"], params["b_hh"]

    def step(h, x_t):
        gi = x_t @ w_ih_t + b_ih
        gh = h @ w_hh_t + b_hh
        r = jax.nn.sigmoid(gi[:, :H] + gh[:, :H])
        z = jax.nn.sigmoid(gi[:, H:2 * H] + gh[:, H:2 * H])
        n = jnp.tanh(gi[:, 2 * H:] + r * gh[:, 2 * H:])
        h_new = (1.0 - z) * n + z * h
        return h_new, h_new

    h0 = jnp.zeros((B, H), jnp.float32)
    h_last, ys = jax.lax.scan(step, h0, jnp.transpose(emb, (1, 0, 2)))
    return jnp.transpose(ys, (1, 0, 2)), h_last[None]


if __name__ == "__main__":
    # Small shapes implied by Encoder.forward: token ids (B, T), hidden H.
    B, T, H, VOCAB = 2, 8, 32, 16

    key = jax.random.PRNGKey(0)
    k_params, k_idx = jax.random.split(key)
    params = init_params(k_params, VOCAB, H)
    x_idx = jax.random.randint(k_idx, (B, T), 0, VOCAB, dtype=jnp.int32)

    output, hidden = jax.block_until_ready(encoder_forward(x_idx, params))
    ref_out, ref_hid = jax.block_until_ready(reference_forward(x_idx, params))

    assert output.shape == (B, T, H) and hidden.shape == (1, B, H)
    np.testing.assert_allclose(np.asarray(output), np.asarray(ref_out), rtol=1e-5, atol=1e-5)
    np.testing.assert_allclose(np.asarray(hidden), np.asarray(ref_hid), rtol=1e-5, atol=1e-5)

    print("KERNEL_OK")
</pallas_src>

<mosaic_0001>
module attributes {stable_mosaic.version = 11 : i64} {
  func.func @encoder_gru_kernel(%arg0: i32, %arg1: memref<8x8x128xf32, #tpu.memory_space<vmem>>, %arg2: memref<128x384xf32, #tpu.memory_space<vmem>>, %arg3: memref<128x384xf32, #tpu.memory_space<vmem>>, %arg4: memref<1x384xf32, #tpu.memory_space<vmem>>, %arg5: memref<1x128xf32, #tpu.memory_space<vmem>>, %arg6: memref<8x1024xf32, #tpu.memory_space<vmem>>, %arg7: memref<8x128xf32, #tpu.memory_space<vmem>>, %arg8: memref<64x384xf32, #tpu.memory_space<vmem>>, %arg9: memref<8x8x128xf32, #tpu.memory_space<vmem>>) attributes {dimension_semantics = [#tpu.dimension_semantics<parallel>], iteration_bounds = array<i64: 1>, scalar_prefetch = 0 : i64, scratch_operands = 2 : i64, tpu.core_type = #tpu.core_type<tc>, window_params = [{transform_indices = @transform_0, window_bounds = array<i64: 8, 8, 128>}, {pipeline_mode = #tpu.pipeline_mode<synchronous>, transform_indices = @transform_1, window_bounds = array<i64: 128, 384>}, {pipeline_mode = #tpu.pipeline_mode<synchronous>, transform_indices = @transform_2, window_bounds = array<i64: 128, 384>}, {pipeline_mode = #tpu.pipeline_mode<synchronous>, transform_indices = @transform_3, window_bounds = array<i64: 1, 384>}, {pipeline_mode = #tpu.pipeline_mode<synchronous>, transform_indices = @transform_4, window_bounds = array<i64: 1, 128>}, {transform_indices = @transform_5, window_bounds = array<i64: 8, 1024>}, {transform_indices = @transform_6, window_bounds = array<i64: 8, 128>}]} {
    %c0 = arith.constant 0 : index
    %c0_0 = arith.constant 0 : index
    %c0_1 = arith.constant 0 : index
    %0 = vector.load %arg1[%c0, %c0_0, %c0_1] : memref<8x8x128xf32, #tpu.memory_space<vmem>>, vector<8x8x128xf32>
    %1 = vector.shape_cast %0 : vector<8x8x128xf32> to vector<64x128xf32>
    %c0_2 = arith.constant 0 : index
    %c0_3 = arith.constant 0 : index
    %2 = vector.load %arg2[%c0_2, %c0_3] : memref<128x384xf32, #tpu.memory_space<vmem>>, vector<128x384xf32>
    %cst = arith.constant dense<0.000000e+00> : vector<64x384xf32>
    %3 = tpu.matmul %1, %2, %cst {dimension_numbers = #tpu.dot_dimension_numbers<[1], [0], [0], [1], [0, 0, 1, 1], [], []>} : vector<64x128xf32>, vector<128x384xf32>, vector<64x384xf32> -> vector<64x384xf32>
    %c0_4 = arith.constant 0 : index
    %c0_5 = arith.constant 0 : index
    %4 = vector.load %arg4[%c0_4, %c0_5] : memref<1x384xf32, #tpu.memory_space<vmem>>, vector<1x384xf32>
    %5 = vector.broadcast %4 : vector<1x384xf32> to vector<64x384xf32>
    %6 = arith.addf %3, %5 : vector<64x384xf32>
    %c0_6 = arith.constant 0 : index
    %c0_7 = arith.constant 0 : index
    %7 = vector.load %arg8[%c0_6, %c0_7] : memref<64x384xf32, #tpu.memory_space<vmem>>, vector<64x384xf32>
    tpu.vector_store %arg8[%c0_6, %c0_7], %6 {strides = array<i32>} : memref<64x384xf32, #tpu.memory_space<vmem>>, vector<64x384xf32>,
    %c0_8 = arith.constant 0 : index
    %c0_9 = arith.constant 0 : index
    %8 = vector.load %arg3[%c0_8, %c0_9] : memref<128x384xf32, #tpu.memory_space<vmem>>, vector<128x384xf32>
    %c0_10 = arith.constant 0 : index
    %c0_11 = arith.constant 0 : index
    %9 = vector.load %arg5[%c0_10, %c0_11] : memref<1x128xf32, #tpu.memory_space<vmem>>, vector<1x128xf32>
    %10 = vector.shape_cast %9 : vector<1x128xf32> to vector<1x128xf32>
    %11 = vector.broadcast %10 : vector<1x128xf32> to vector<8x128xf32>
    %cst_12 = arith.constant 0.000000e+00 : f32
    %12 = vector.broadcast %cst_12 : f32 to vector<8x128xf32>
    %c0_i32 = arith.constant 0 : i32
    %c8_i32 = arith.constant 8 : i32
    %13 = arith.muli %c0_i32, %c8_i32 : i32
    %14 = tpu.assume_multiple %13, 8 : i32
    %15 = arith.index_cast %14 : i32 to index
    %c0_13 = arith.constant 0 : index
    %16 = vector.load %arg8[%15, %c0_13] : memref<64x384xf32, #tpu.memory_space<vmem>>, vector<8x384xf32>
    %cst_14 = arith.constant dense<0.000000e+00> : vector<8x384xf32>
    %17 = tpu.matmul %12, %8, %cst_14 {dimension_numbers = #tpu.dot_dimension_numbers<[1], [0], [0], [1], [0, 0, 1, 1], [], []>} : vector<8x128xf32>, vector<128x384xf32>, vector<8x384xf32> -> vector<8x384xf32>
    %18 = vector.extract_strided_slice %16 {offsets = [0, 0], sizes = [8, 128], strides = [1, 1]} : vector<8x384xf32> to vector<8x128xf32>
    %19 = vector.extract_strided_slice %17 {offsets = [0, 0], sizes = [8, 128], strides = [1, 1]} : vector<8x384xf32> to vector<8x128xf32>
    %20 = arith.addf %18, %19 : vector<8x128xf32>
    %21 = arith.negf %20 : vector<8x128xf32>
    %22 = math.exp %21 : vector<8x128xf32>
    %cst_15 = arith.constant 1.000000e+00 : f32
    %23 = vector.broadcast %cst_15 : f32 to vector<8x128xf32>
    %24 = arith.addf %23, %22 : vector<8x128xf32>
    %25 = arith.divf %23, %24 : vector<8x128xf32>
    %26 = vector.extract_strided_slice %16 {offsets = [0, 128], sizes = [8, 128], strides = [1, 1]} : vector<8x384xf32> to vector<8x128xf32>
    %27 = vector.extract_strided_slice %17 {offsets = [0, 128], sizes = [8, 128], strides = [1, 1]} : vector<8x384xf32> to vector<8x128xf32>
    %28 = arith.addf %26, %27 : vector<8x128xf32>
    %29 = arith.negf %28 : vector<8x128xf32>
    %30 = math.exp %29 : vector<8x128xf32>
    %cst_16 = arith.constant 1.000000e+00 : f32
    %31 = vector.broadcast %cst_16 : f32 to vector<8x128xf32>
    %32 = arith.addf %31, %30 : vector<8x128xf32>
    %33 = arith.divf %31, %32 : vector<8x128xf32>
    %34 = vector.extract_strided_slice %16 {offsets = [0, 256], sizes = [8, 128], strides = [1, 1]} : vector<8x384xf32> to vector<8x128xf32>
    %35 = vector.extract_strided_slice %17 {offsets = [0, 256], sizes = [8, 128], strides = [1, 1]} : vector<8x384xf32> to vector<8x128xf32>
    %36 = arith.addf %35, %11 : vector<8x128xf32>
    %37 = arith.mulf %25, %36 : vector<8x128xf32>
    %38 = arith.addf %34, %37 : vector<8x128xf32>
    %39 = math.tanh %38 : vector<8x128xf32>
    %40 = arith.subf %12, %39 : vector<8x128xf32>
    %41 = arith.mulf %33, %40 : vector<8x128xf32>
    %42 = arith.addf %39, %41 : vector<8x128xf32>
    %43 = arith.index_cast %c0_i32 : i32 to index
    %c0_17 = arith.constant 0 : index
    %c0_18 = arith.constant 0 : index
    %44 = vector.load %arg9[%43, %c0_17, %c0_18] : memref<8x8x128xf32, #tpu.memory_space<vmem>>, vector<1x8x128xf32>
    %45 = vector.shape_cast %44 : vector<1x8x128xf32> to vector<8x128xf32>
    %46 = vector.shape_cast %42 : vector<8x128xf32> to vector<1x8x128xf32>
    tpu.vector_store %arg9[%43, %c0_17, %c0_18], %46 {strides = array<i32>} : memref<8x8x128xf32, #tpu.memory_space<vmem>>, vector<1x8x128xf32>,
    %c1_i32 = arith.constant 1 : i32
    %c8_i32_19 = arith.constant 8 : i32
    %47 = arith.muli %c1_i32, %c8_i32_19 : i32
    %48 = tpu.assume_multiple %47, 8 : i32
    %49 = arith.index_cast %48 : i32 to index
    %c0_20 = arith.constant 0 : index
    %50 = vector.load %arg8[%49, %c0_20] : memref<64x384xf32, #tpu.memory_space<vmem>>, vector<8x384xf32>
    %cst_21 = arith.constant dense<0.000000e+00> : vector<8x384xf32>
    %51 = tpu.matmul %42, %8, %cst_21 {dimension_numbers = #tpu.dot_dimension_numbers<[1], [0], [0], [1], [0, 0, 1, 1], [], []>} : vector<8x128xf32>, vector<128x384xf32>, vector<8x384xf32> -> vector<8x384xf32>
    %52 = vector.extract_strided_slice %50 {offsets = [0, 0], sizes = [8, 128], strides = [1, 1]} : vector<8x384xf32> to vector<8x128xf32>
    %53 = vector.extract_strided_slice %51 {offsets = [0, 0], sizes = [8, 128], strides = [1, 1]} : vector<8x384xf32> to vector<8x128xf32>
    %54 = arith.addf %52, %53 : vector<8x128xf32>
    %55 = arith.negf %54 : vector<8x128xf32>
    %56 = math.exp %55 : vector<8x128xf32>
    %cst_22 = arith.constant 1.000000e+00 : f32
    %57 = vector.broadcast %cst_22 : f32 to vector<8x128xf32>
    %58 = arith.addf %57, %56 : vector<8x128xf32>
    %59 = arith.divf %57, %58 : vector<8x128xf32>
    %60 = vector.extract_strided_slice %50 {offsets = [0, 128], sizes = [8, 128], strides = [1, 1]} : vector<8x384xf32> to vector<8x128xf32>
    %61 = vector.extract_strided_slice %51 {offsets = [0, 128], sizes = [8, 128], strides = [1, 1]} : vector<8x384xf32> to vector<8x128xf32>
    %62 = arith.addf %60, %61 : vector<8x128xf32>
    %63 = arith.negf %62 : vector<8x128xf32>
    %64 = math.exp %63 : vector<8x128xf32>
    %cst_23 = arith.constant 1.000000e+00 : f32
    %65 = vector.broadcast %cst_23 : f32 to vector<8x128xf32>
    %66 = arith.addf %65, %64 : vector<8x128xf32>
    %67 = arith.divf %65, %66 : vector<8x128xf32>
    %68 = vector.extract_strided_slice %50 {offsets = [0, 256], sizes = [8, 128], strides = [1, 1]} : vector<8x384xf32> to vector<8x128xf32>
    %69 = vector.extract_strided_slice %51 {offsets = [0, 256], sizes = [8, 128], strides = [1, 1]} : vector<8x384xf32> to vector<8x128xf32>
    %70 = arith.addf %69, %11 : vector<8x128xf32>
    %71 = arith.mulf %59, %70 : vector<8x128xf32>
    %72 = arith.addf %68, %71 : vector<8x128xf32>
    %73 = math.tanh %72 : vector<8x128xf32>
    %74 = arith.subf %42, %73 : vector<8x128xf32>
    %75 = arith.mulf %67, %74 : vector<8x128xf32>
    %76 = arith.addf %73, %75 : vector<8x128xf32>
    %77 = arith.index_cast %c1_i32 : i32 to index
    %c0_24 = arith.constant 0 : index
    %c0_25 = arith.constant 0 : index
    %78 = vector.load %arg9[%77, %c0_24, %c0_25] : memref<8x8x128xf32, #tpu.memory_space<vmem>>, vector<1x8x128xf32>
    %79 = vector.shape_cast %78 : vector<1x8x128xf32> to vector<8x128xf32>
    %80 = vector.shape_cast %76 : vector<8x128xf32> to vector<1x8x128xf32>
    tpu.vector_store %arg9[%77, %c0_24, %c0_25], %80 {strides = array<i32>} : memref<8x8x128xf32, #tpu.memory_space<vmem>>, vector<1x8x128xf32>,
    %c2_i32 = arith.constant 2 : i32
    %c8_i32_26 = arith.constant 8 : i32
    %81 = arith.muli %c2_i32, %c8_i32_26 : i32
    %82 = tpu.assume_multiple %81, 8 : i32
    %83 = arith.index_cast %82 : i32 to index
    %c0_27 = arith.constant 0 : index
    %84 = vector.load %arg8[%83, %c0_27] : memref<64x384xf32, #tpu.memory_space<vmem>>, vector<8x384xf32>
    %cst_28 = arith.constant dense<0.000000e+00> : vector<8x384xf32>
    %85 = tpu.matmul %76, %8, %cst_28 {dimension_numbers = #tpu.dot_dimension_numbers<[1], [0], [0], [1], [0, 0, 1, 1], [], []>} : vector<8x128xf32>, vector<128x384xf32>, vector<8x384xf32> -> vector<8x384xf32>
    %86 = vector.extract_strided_slice %84 {offsets = [0, 0], sizes = [8, 128], strides = [1, 1]} : vector<8x384xf32> to vector<8x128xf32>
    %87 = vector.extract_strided_slice %85 {offsets = [0, 0], sizes = [8, 128], strides = [1, 1]} : vector<8x384xf32> to vector<8x128xf32>
    %88 = arith.addf %86, %87 : vector<8x128xf32>
    %89 = arith.negf %88 : vector<8x128xf32>
    %90 = math.exp %89 : vector<8x128xf32>
    %cst_29 = arith.constant 1.000000e+00 : f32
    %91 = vector.broadcast %cst_29 : f32 to vector<8x128xf32>
    %92 = arith.addf %91, %90 : vector<8x128xf32>
    %93 = arith.divf %91, %92 : vector<8x128xf32>
    %94 = vector.extract_strided_slice %84 {offsets = [0, 128], sizes = [8, 128], strides = [1, 1]} : vector<8x384xf32> to vector<8x128xf32>
    %95 = vector.extract_strided_slice %85 {offsets = [0, 128], sizes = [8, 128], strides = [1, 1]} : vector<8x384xf32> to vector<8x128xf32>
    %96 = arith.addf %94, %95 : vector<8x128xf32>
    %97 = arith.negf %96 : vector<8x128xf32>
    %98 = math.exp %97 : vector<8x128xf32>
    %cst_30 = arith.constant 1.000000e+00 : f32
    %99 = vector.broadcast %cst_30 : f32 to vector<8x128xf32>
    %100 = arith.addf %99, %98 : vector<8x128xf32>
    %101 = arith.divf %99, %100 : vector<8x128xf32>
    %102 = vector.extract_strided_slice %84 {offsets = [0, 256], sizes = [8, 128], strides = [1, 1]} : vector<8x384xf32> to vector<8x128xf32>
    %103 = vector.extract_strided_slice %85 {offsets = [0, 256], sizes = [8, 128], strides = [1, 1]} : vector<8x384xf32> to vector<8x128xf32>
    %104 = arith.addf %103, %11 : vector<8x128xf32>
    %105 = arith.mulf %93, %104 : vector<8x128xf32>
    %106 = arith.addf %102, %105 : vector<8x128xf32>
    %107 = math.tanh %106 : vector<8x128xf32>
    %108 = arith.subf %76, %107 : vector<8x128xf32>
    %109 = arith.mulf %101, %108 : vector<8x128xf32>
    %110 = arith.addf %107, %109 : vector<8x128xf32>
    %111 = arith.index_cast %c2_i32 : i32 to index
    %c0_31 = arith.constant 0 : index
    %c0_32 = arith.constant 0 : index
    %112 = vector.load %arg9[%111, %c0_31, %c0_32] : memref<8x8x128xf32, #tpu.memory_space<vmem>>, vector<1x8x128xf32>
    %113 = vector.shape_cast %112 : vector<1x8x128xf32> to vector<8x128xf32>
    %114 = vector.shape_cast %110 : vector<8x128xf32> to vector<1x8x128xf32>
    tpu.vector_store %arg9[%111, %c0_31, %c0_32], %114 {strides = array<i32>} : memref<8x8x128xf32, #tpu.memory_space<vmem>>, vector<1x8x128xf32>,
    %c3_i32 = arith.constant 3 : i32
    %c8_i32_33 = arith.constant 8 : i32
    %115 = arith.muli %c3_i32, %c8_i32_33 : i32
    %116 = tpu.assume_multiple %115, 8 : i32
    %117 = arith.index_cast %116 : i32 to index
    %c0_34 = arith.constant 0 : index
    %118 = vector.load %arg8[%117, %c0_34] : memref<64x384xf32, #tpu.memory_space<vmem>>, vector<8x384xf32>
    %cst_35 = arith.constant dense<0.000000e+00> : vector<8x384xf32>
    %119 = tpu.matmul %110, %8, %cst_35 {dimension_numbers = #tpu.dot_dimension_numbers<[1], [0], [0], [1], [0, 0, 1, 1], [], []>} : vector<8x128xf32>, vector<128x384xf32>, vector<8x384xf32> -> vector<8x384xf32>
    %120 = vector.extract_strided_slice %118 {offsets = [0, 0], sizes = [8, 128], strides = [1, 1]} : vector<8x384xf32> to vector<8x128xf32>
    %121 = vector.extract_strided_slice %119 {offsets = [0, 0], sizes = [8, 128], strides = [1, 1]} : vector<8x384xf32> to vector<8x128xf32>
    %122 = arith.addf %120, %121 : vector<8x128xf32>
    %123 = arith.negf %122 : vector<8x128xf32>
    %124 = math.exp %123 : vector<8x128xf32>
    %cst_36 = arith.constant 1.000000e+00 : f32
    %125 = vector.broadcast %cst_36 : f32 to vector<8x128xf32>
    %126 = arith.addf %125, %124 : vector<8x128xf32>
    %127 = arith.divf %125, %126 : vector<8x128xf32>
    %128 = vector.extract_strided_slice %118 {offsets = [0, 128], sizes = [8, 128], strides = [1, 1]} : vector<8x384xf32> to vector<8x128xf32>
    %129 = vector.extract_strided_slice %119 {offsets = [0, 128], sizes = [8, 128], strides = [1, 1]} : vector<8x384xf32> to vector<8x128xf32>
    %130 = arith.addf %128, %129 : vector<8x128xf32>
    %131 = arith.negf %130 : vector<8x128xf32>
    %132 = math.exp %131 : vector<8x128xf32>
    %cst_37 = arith.constant 1.000000e+00 : f32
    %133 = vector.broadcast %cst_37 : f32 to vector<8x128xf32>
    %134 = arith.addf %133, %132 : vector<8x128xf32>
    %135 = arith.divf %133, %134 : vector<8x128xf32>
    %136 = vector.extract_strided_slice %118 {offsets = [0, 256], sizes = [8, 128], strides = [1, 1]} : vector<8x384xf32> to vector<8x128xf32>
    %137 = vector.extract_strided_slice %119 {offsets = [0, 256], sizes = [8, 128], strides = [1, 1]} : vector<8x384xf32> to vector<8x128xf32>
    %138 = arith.addf %137, %11 : vector<8x128xf32>
    %139 = arith.mulf %127, %138 : vector<8x128xf32>
    %140 = arith.addf %136, %139 : vector<8x128xf32>
    %141 = math.tanh %140 : vector<8x128xf32>
    %142 = arith.subf %110, %141 : vector<8x128xf32>
    %143 = arith.mulf %135, %142 : vector<8x128xf32>
    %144 = arith.addf %141, %143 : vector<8x128xf32>
    %145 = arith.index_cast %c3_i32 : i32 to index
    %c0_38 = arith.constant 0 : index
    %c0_39 = arith.constant 0 : index
    %146 = vector.load %arg9[%145, %c0_38, %c0_39] : memref<8x8x128xf32, #tpu.memory_space<vmem>>, vector<1x8x128xf32>
    %147 = vector.shape_cast %146 : vector<1x8x128xf32> to vector<8x128xf32>
    %148 = vector.shape_cast %144 : vector<8x128xf32> to vector<1x8x128xf32>
    tpu.vector_store %arg9[%145, %c0_38, %c0_39], %148 {strides = array<i32>} : memref<8x8x128xf32, #tpu.memory_space<vmem>>, vector<1x8x128xf32>,
    %c4_i32 = arith.constant 4 : i32
    %c8_i32_40 = arith.constant 8 : i32
    %149 = arith.muli %c4_i32, %c8_i32_40 : i32
    %150 = tpu.assume_multiple %149, 8 : i32
    %151 = arith.index_cast %150 : i32 to index
    %c0_41 = arith.constant 0 : index
    %152 = vector.load %arg8[%151, %c0_41] : memref<64x384xf32, #tpu.memory_space<vmem>>, vector<8x384xf32>
    %cst_42 = arith.constant dense<0.000000e+00> : vector<8x384xf32>
    %153 = tpu.matmul %144, %8, %cst_42 {dimension_numbers = #tpu.dot_dimension_numbers<[1], [0], [0], [1], [0, 0, 1, 1], [], []>} : vector<8x128xf32>, vector<128x384xf32>, vector<8x384xf32> -> vector<8x384xf32>
    %154 = vector.extract_strided_slice %152 {offsets = [0, 0], sizes = [8, 128], strides = [1, 1]} : vector<8x384xf32> to vector<8x128xf32>
    %155 = vector.extract_strided_slice %153 {offsets = [0, 0], sizes = [8, 128], strides = [1, 1]} : vector<8x384xf32> to vector<8x128xf32>
    %156 = arith.addf %154, %155 : vector<8x128xf32>
    %157 = arith.negf %156 : vector<8x128xf32>
    %158 = math.exp %157 : vector<8x128xf32>
    %cst_43 = arith.constant 1.000000e+00 : f32
    %159 = vector.broadcast %cst_43 : f32 to vector<8x128xf32>
    %160 = arith.addf %159, %158 : vector<8x128xf32>
    %161 = arith.divf %159, %160 : vector<8x128xf32>
    %162 = vector.extract_strided_slice %152 {offsets = [0, 128], sizes = [8, 128], strides = [1, 1]} : vector<8x384xf32> to vector<8x128xf32>
    %163 = vector.extract_strided_slice %153 {offsets = [0, 128], sizes = [8, 128], strides = [1, 1]} : vector<8x384xf32> to vector<8x128xf32>
    %164 = arith.addf %162, %163 : vector<8x128xf32>
    %165 = arith.negf %164 : vector<8x128xf32>
    %166 = math.exp %165 : vector<8x128xf32>
    %cst_44 = arith.constant 1.000000e+00 : f32
    %167 = vector.broadcast %cst_44 : f32 to vector<8x128xf32>
    %168 = arith.addf %167, %166 : vector<8x128xf32>
    %169 = arith.divf %167, %168 : vector<8x128xf32>
    %170 = vector.extract_strided_slice %152 {offsets = [0, 256], sizes = [8, 128], strides = [1, 1]} : vector<8x384xf32> to vector<8x128xf32>
    %171 = vector.extract_strided_slice %153 {offsets = [0, 256], sizes = [8, 128], strides = [1, 1]} : vector<8x384xf32> to vector<8x128xf32>
    %172 = arith.addf %171, %11 : vector<8x128xf32>
    %173 = arith.mulf %161, %172 : vector<8x128xf32>
    %174 = arith.addf %170, %173 : vector<8x128xf32>
    %175 = math.tanh %174 : vector<8x128xf32>
    %176 = arith.subf %144, %175 : vector<8x128xf32>
    %177 = arith.mulf %169, %176 : vector<8x128xf32>
    %178 = arith.addf %175, %177 : vector<8x128xf32>
    %179 = arith.index_cast %c4_i32 : i32 to index
    %c0_45 = arith.constant 0 : index
    %c0_46 = arith.constant 0 : index
    %180 = vector.load %arg9[%179, %c0_45, %c0_46] : memref<8x8x128xf32, #tpu.memory_space<vmem>>, vector<1x8x128xf32>
    %181 = vector.shape_cast %180 : vector<1x8x128xf32> to vector<8x128xf32>
    %182 = vector.shape_cast %178 : vector<8x128xf32> to vector<1x8x128xf32>
    tpu.vector_store %arg9[%179, %c0_45, %c0_46], %182 {strides = array<i32>} : memref<8x8x128xf32, #tpu.memory_space<vmem>>, vector<1x8x128xf32>,
    %c5_i32 = arith.constant 5 : i32
    %c8_i32_47 = arith.constant 8 : i32
    %183 = arith.muli %c5_i32, %c8_i32_47 : i32
    %184 = tpu.assume_multiple %183, 8 : i32
    %185 = arith.index_cast %184 : i32 to index
    %c0_48 = arith.constant 0 : index
    %186 = vector.load %arg8[%185, %c0_48] : memref<64x384xf32, #tpu.memory_space<vmem>>, vector<8x384xf32>
    %cst_49 = arith.constant dense<0.000000e+00> : vector<8x384xf32>
    %187 = tpu.matmul %178, %8, %cst_49 {dimension_numbers = #tpu.dot_dimension_numbers<[1], [0], [0], [1], [0, 0, 1, 1], [], []>} : vector<8x128xf32>, vector<128x384xf32>, vector<8x384xf32> -> vector<8x384xf32>
    %188 = vector.extract_strided_slice %186 {offsets = [0, 0], sizes = [8, 128], strides = [1, 1]} : vector<8x384xf32> to vector<8x128xf32>
    %189 = vector.extract_strided_slice %187 {offsets = [0, 0], sizes = [8, 128], strides = [1, 1]} : vector<8x384xf32> to vector<8x128xf32>
    %190 = arith.addf %188, %189 : vector<8x128xf32>
    %191 = arith.negf %190 : vector<8x128xf32>
    %192 = math.exp %191 : vector<8x128xf32>
    %cst_50 = arith.constant 1.000000e+00 : f32
    %193 = vector.broadcast %cst_50 : f32 to vector<8x128xf32>
    %194 = arith.addf %193, %192 : vector<8x128xf32>
    %195 = arith.divf %193, %194 : vector<8x128xf32>
    %196 = vector.extract_strided_slice %186 {offsets = [0, 128], sizes = [8, 128], strides = [1, 1]} : vector<8x384xf32> to vector<8x128xf32>
    %197 = vector.extract_strided_slice %187 {offsets = [0, 128], sizes = [8, 128], strides = [1, 1]} : vector<8x384xf32> to vector<8x128xf32>
    %198 = arith.addf %196, %197 : vector<8x128xf32>
    %199 = arith.negf %198 : vector<8x128xf32>
    %200 = math.exp %199 : vector<8x128xf32>
    %cst_51 = arith.constant 1.000000e+00 : f32
    %201 = vector.broadcast %cst_51 : f32 to vector<8x128xf32>
    %202 = arith.addf %201, %200 : vector<8x128xf32>
    %203 = arith.divf %201, %202 : vector<8x128xf32>
    %204 = vector.extract_strided_slice %186 {offsets = [0, 256], sizes = [8, 128], strides = [1, 1]} : vector<8x384xf32> to vector<8x128xf32>
    %205 = vector.extract_strided_slice %187 {offsets = [0, 256], sizes = [8, 128], strides = [1, 1]} : vector<8x384xf32> to vector<8x128xf32>
    %206 = arith.addf %205, %11 : vector<8x128xf32>
    %207 = arith.mulf %195, %206 : vector<8x128xf32>
    %208 = arith.addf %204, %207 : vector<8x128xf32>
    %209 = math.tanh %208 : vector<8x128xf32>
    %210 = arith.subf %178, %209 : vector<8x128xf32>
    %211 = arith.mulf %203, %210 : vector<8x128xf32>
    %212 = arith.addf %209, %211 : vector<8x128xf32>
    %213 = arith.index_cast %c5_i32 : i32 to index
    %c0_52 = arith.constant 0 : index
    %c0_53 = arith.constant 0 : index
    %214 = vector.load %arg9[%213, %c0_52, %c0_53] : memref<8x8x128xf32, #tpu.memory_space<vmem>>, vector<1x8x128xf32>
    %215 = vector.shape_cast %214 : vector<1x8x128xf32> to vector<8x128xf32>
    %216 = vector.shape_cast %212 : vector<8x128xf32> to vector<1x8x128xf32>
    tpu.vector_store %arg9[%213, %c0_52, %c0_53], %216 {strides = array<i32>} : memref<8x8x128xf32, #tpu.memory_space<vmem>>, vector<1x8x128xf32>,
    %c6_i32 = arith.constant 6 : i32
    %c8_i32_54 = arith.constant 8 : i32
    %217 = arith.muli %c6_i32, %c8_i32_54 : i32
    %218 = tpu.assume_multiple %217, 8 : i32
    %219 = arith.index_cast %218 : i32 to index
    %c0_55 = arith.constant 0 : index
    %220 = vector.load %arg8[%219, %c0_55] : memref<64x384xf32, #tpu.memory_space<vmem>>, vector<8x384xf32>
    %cst_56 = arith.constant dense<0.000000e+00> : vector<8x384xf32>
    %221 = tpu.matmul %212, %8, %cst_56 {dimension_numbers = #tpu.dot_dimension_numbers<[1], [0], [0], [1], [0, 0, 1, 1], [], []>} : vector<8x128xf32>, vector<128x384xf32>, vector<8x384xf32> -> vector<8x384xf32>
    %222 = vector.extract_strided_slice %220 {offsets = [0, 0], sizes = [8, 128], strides = [1, 1]} : vector<8x384xf32> to vector<8x128xf32>
    %223 = vector.extract_strided_slice %221 {offsets = [0, 0], sizes = [8, 128], strides = [1, 1]} : vector<8x384xf32> to vector<8x128xf32>
    %224 = arith.addf %222, %223 : vector<8x128xf32>
    %225 = arith.negf %224 : vector<8x128xf32>
    %226 = math.exp %225 : vector<8x128xf32>
    %cst_57 = arith.constant 1.000000e+00 : f32
    %227 = vector.broadcast %cst_57 : f32 to vector<8x128xf32>
    %228 = arith.addf %227, %226 : vector<8x128xf32>
    %229 = arith.divf %227, %228 : vector<8x128xf32>
    %230 = vector.extract_strided_slice %220 {offsets = [0, 128], sizes = [8, 128], strides = [1, 1]} : vector<8x384xf32> to vector<8x128xf32>
    %231 = vector.extract_strided_slice %221 {offsets = [0, 128], sizes = [8, 128], strides = [1, 1]} : vector<8x384xf32> to vector<8x128xf32>
    %232 = arith.addf %230, %231 : vector<8x128xf32>
    %233 = arith.negf %232 : vector<8x128xf32>
    %234 = math.exp %233 : vector<8x128xf32>
    %cst_58 = arith.constant 1.000000e+00 : f32
    %235 = vector.broadcast %cst_58 : f32 to vector<8x128xf32>
    %236 = arith.addf %235, %234 : vector<8x128xf32>
    %237 = arith.divf %235, %236 : vector<8x128xf32>
    %238 = vector.extract_strided_slice %220 {offsets = [0, 256], sizes = [8, 128], strides = [1, 1]} : vector<8x384xf32> to vector<8x128xf32>
    %239 = vector.extract_strided_slice %221 {offsets = [0, 256], sizes = [8, 128], strides = [1, 1]} : vector<8x384xf32> to vector<8x128xf32>
    %240 = arith.addf %239, %11 : vector<8x128xf32>
    %241 = arith.mulf %229, %240 : vector<8x128xf32>
    %242 = arith.addf %238, %241 : vector<8x128xf32>
    %243 = math.tanh %242 : vector<8x128xf32>
    %244 = arith.subf %212, %243 : vector<8x128xf32>
    %245 = arith.mulf %237, %244 : vector<8x128xf32>
    %246 = arith.addf %243, %245 : vector<8x128xf32>
    %247 = arith.index_cast %c6_i32 : i32 to index
    %c0_59 = arith.constant 0 : index
    %c0_60 = arith.constant 0 : index
    %248 = vector.load %arg9[%247, %c0_59, %c0_60] : memref<8x8x128xf32, #tpu.memory_space<vmem>>, vector<1x8x128xf32>
    %249 = vector.shape_cast %248 : vector<1x8x128xf32> to vector<8x128xf32>
    %250 = vector.shape_cast %246 : vector<8x128xf32> to vector<1x8x128xf32>
    tpu.vector_store %arg9[%247, %c0_59, %c0_60], %250 {strides = array<i32>} : memref<8x8x128xf32, #tpu.memory_space<vmem>>, vector<1x8x128xf32>,
    %c7_i32 = arith.constant 7 : i32
    %c8_i32_61 = arith.constant 8 : i32
    %251 = arith.muli %c7_i32, %c8_i32_61 : i32
    %252 = tpu.assume_multiple %251, 8 : i32
    %253 = arith.index_cast %252 : i32 to index
    %c0_62 = arith.constant 0 : index
    %254 = vector.load %arg8[%253, %c0_62] : memref<64x384xf32, #tpu.memory_space<vmem>>, vector<8x384xf32>
    %cst_63 = arith.constant dense<0.000000e+00> : vector<8x384xf32>
    %255 = tpu.matmul %246, %8, %cst_63 {dimension_numbers = #tpu.dot_dimension_numbers<[1], [0], [0], [1], [0, 0, 1, 1], [], []>} : vector<8x128xf32>, vector<128x384xf32>, vector<8x384xf32> -> vector<8x384xf32>
    %256 = vector.extract_strided_slice %254 {offsets = [0, 0], sizes = [8, 128], strides = [1, 1]} : vector<8x384xf32> to vector<8x128xf32>
    %257 = vector.extract_strided_slice %255 {offsets = [0, 0], sizes = [8, 128], strides = [1, 1]} : vector<8x384xf32> to vector<8x128xf32>
    %258 = arith.addf %256, %257 : vector<8x128xf32>
    %259 = arith.negf %258 : vector<8x128xf32>
    %260 = math.exp %259 : vector<8x128xf32>
    %cst_64 = arith.constant 1.000000e+00 : f32
    %261 = vector.broadcast %cst_64 : f32 to vector<8x128xf32>
    %262 = arith.addf %261, %260 : vector<8x128xf32>
    %263 = arith.divf %261, %262 : vector<8x128xf32>
    %264 = vector.extract_strided_slice %254 {offsets = [0, 128], sizes = [8, 128], strides = [1, 1]} : vector<8x384xf32> to vector<8x128xf32>
    %265 = vector.extract_strided_slice %255 {offsets = [0, 128], sizes = [8, 128], strides = [1, 1]} : vector<8x384xf32> to vector<8x128xf32>
    %266 = arith.addf %264, %265 : vector<8x128xf32>
    %267 = arith.negf %266 : vector<8x128xf32>
    %268 = math.exp %267 : vector<8x128xf32>
    %cst_65 = arith.constant 1.000000e+00 : f32
    %269 = vector.broadcast %cst_65 : f32 to vector<8x128xf32>
    %270 = arith.addf %269, %268 : vector<8x128xf32>
    %271 = arith.divf %269, %270 : vector<8x128xf32>
    %272 = vector.extract_strided_slice %254 {offsets = [0, 256], sizes = [8, 128], strides = [1, 1]} : vector<8x384xf32> to vector<8x128xf32>
    %273 = vector.extract_strided_slice %255 {offsets = [0, 256], sizes = [8, 128], strides = [1, 1]} : vector<8x384xf32> to vector<8x128xf32>
    %274 = arith.addf %273, %11 : vector<8x128xf32>
    %275 = arith.mulf %263, %274 : vector<8x128xf32>
    %276 = arith.addf %272, %275 : vector<8x128xf32>
    %277 = math.tanh %276 : vector<8x128xf32>
    %278 = arith.subf %246, %277 : vector<8x128xf32>
    %279 = arith.mulf %271, %278 : vector<8x128xf32>
    %280 = arith.addf %277, %279 : vector<8x128xf32>
    %281 = arith.index_cast %c7_i32 : i32 to index
    %c0_66 = arith.constant 0 : index
    %c0_67 = arith.constant 0 : index
    %282 = vector.load %arg9[%281, %c0_66, %c0_67] : memref<8x8x128xf32, #tpu.memory_space<vmem>>, vector<1x8x128xf32>
    %283 = vector.shape_cast %282 : vector<1x8x128xf32> to vector<8x128xf32>
    %284 = vector.shape_cast %280 : vector<8x128xf32> to vector<1x8x128xf32>
    tpu.vector_store %arg9[%281, %c0_66, %c0_67], %284 {strides = array<i32>} : memref<8x8x128xf32, #tpu.memory_space<vmem>>, vector<1x8x128xf32>,
    %c8_i32_68 = arith.constant 8 : i32
    %c0_69 = arith.constant 0 : index
    %c0_70 = arith.constant 0 : index
    %c0_71 = arith.constant 0 : index
    %285 = vector.load %arg9[%c0_69, %c0_70, %c0_71] : memref<8x8x128xf32, #tpu.memory_space<vmem>>, vector<1x8x128xf32>
    %286 = vector.shape_cast %285 : vector<1x8x128xf32> to vector<8x128xf32>
    %c0_72 = arith.constant 0 : index
    %c0_73 = arith.constant 0 : index
    %287 = vector.load %arg6[%c0_72, %c0_73] : memref<8x1024xf32, #tpu.memory_space<vmem>>, vector<8x128xf32>
    tpu.vector_store %arg6[%c0_72, %c0_73], %286 {strides = array<i32>} : memref<8x1024xf32, #tpu.memory_space<vmem>>, vector<8x128xf32>,
    %c1 = arith.constant 1 : index
    %c0_74 = arith.constant 0 : index
    %c0_75 = arith.constant 0 : index
    %288 = vector.load %arg9[%c1, %c0_74, %c0_75] : memref<8x8x128xf32, #tpu.memory_space<vmem>>, vector<1x8x128xf32>
    %289 = vector.shape_cast %288 : vector<1x8x128xf32> to vector<8x128xf32>
    %c0_76 = arith.constant 0 : index
    %c128 = arith.constant 128 : index
    %290 = vector.load %arg6[%c0_76, %c128] : memref<8x1024xf32, #tpu.memory_space<vmem>>, vector<8x128xf32>
    tpu.vector_store %arg6[%c0_76, %c128], %289 {strides = array<i32>} : memref<8x1024xf32, #tpu.memory_space<vmem>>, vector<8x128xf32>,
    %c2 = arith.constant 2 : index
    %c0_77 = arith.constant 0 : index
    %c0_78 = arith.constant 0 : index
    %291 = vector.load %arg9[%c2, %c0_77, %c0_78] : memref<8x8x128xf32, #tpu.memory_space<vmem>>, vector<1x8x128xf32>
    %292 = vector.shape_cast %291 : vector<1x8x128xf32> to vector<8x128xf32>
    %c0_79 = arith.constant 0 : index
    %c256 = arith.constant 256 : index
    %293 = vector.load %arg6[%c0_79, %c256] : memref<8x1024xf32, #tpu.memory_space<vmem>>, vector<8x128xf32>
    tpu.vector_store %arg6[%c0_79, %c256], %292 {strides = array<i32>} : memref<8x1024xf32, #tpu.memory_space<vmem>>, vector<8x128xf32>,
    %c3 = arith.constant 3 : index
    %c0_80 = arith.constant 0 : index
    %c0_81 = arith.constant 0 : index
    %294 = vector.load %arg9[%c3, %c0_80, %c0_81] : memref<8x8x128xf32, #tpu.memory_space<vmem>>, vector<1x8x128xf32>
    %295 = vector.shape_cast %294 : vector<1x8x128xf32> to vector<8x128xf32>
    %c0_82 = arith.constant 0 : index
    %c384 = arith.constant 384 : index
    %296 = vector.load %arg6[%c0_82, %c384] : memref<8x1024xf32, #tpu.memory_space<vmem>>, vector<8x128xf32>
    tpu.vector_store %arg6[%c0_82, %c384], %295 {strides = array<i32>} : memref<8x1024xf32, #tpu.memory_space<vmem>>, vector<8x128xf32>,
    %c4 = arith.constant 4 : index
    %c0_83 = arith.constant 0 : index
    %c0_84 = arith.constant 0 : index
    %297 = vector.load %arg9[%c4, %c0_83, %c0_84] : memref<8x8x128xf32, #tpu.memory_space<vmem>>, vector<1x8x128xf32>
    %298 = vector.shape_cast %297 : vector<1x8x128xf32> to vector<8x128xf32>
    %c0_85 = arith.constant 0 : index
    %c512 = arith.constant 512 : index
    %299 = vector.load %arg6[%c0_85, %c512] : memref<8x1024xf32, #tpu.memory_space<vmem>>, vector<8x128xf32>
    tpu.vector_store %arg6[%c0_85, %c512], %298 {strides = array<i32>} : memref<8x1024xf32, #tpu.memory_space<vmem>>, vector<8x128xf32>,
    %c5 = arith.constant 5 : index
    %c0_86 = arith.constant 0 : index
    %c0_87 = arith.constant 0 : index
    %300 = vector.load %arg9[%c5, %c0_86, %c0_87] : memref<8x8x128xf32, #tpu.memory_space<vmem>>, vector<1x8x128xf32>
    %301 = vector.shape_cast %300 : vector<1x8x128xf32> to vector<8x128xf32>
    %c0_88 = arith.constant 0 : index
    %c640 = arith.constant 640 : index
    %302 = vector.load %arg6[%c0_88, %c640] : memref<8x1024xf32, #tpu.memory_space<vmem>>, vector<8x128xf32>
    tpu.vector_store %arg6[%c0_88, %c640], %301 {strides = array<i32>} : memref<8x1024xf32, #tpu.memory_space<vmem>>, vector<8x128xf32>,
    %c6 = arith.constant 6 : index
    %c0_89 = arith.constant 0 : index
    %c0_90 = arith.constant 0 : index
    %303 = vector.load %arg9[%c6, %c0_89, %c0_90] : memref<8x8x128xf32, #tpu.memory_space<vmem>>, vector<1x8x128xf32>
    %304 = vector.shape_cast %303 : vector<1x8x128xf32> to vector<8x128xf32>
    %c0_91 = arith.constant 0 : index
    %c768 = arith.constant 768 : index
    %305 = vector.load %arg6[%c0_91, %c768] : memref<8x1024xf32, #tpu.memory_space<vmem>>, vector<8x128xf32>
    tpu.vector_store %arg6[%c0_91, %c768], %304 {strides = array<i32>} : memref<8x1024xf32, #tpu.memory_space<vmem>>, vector<8x128xf32>,
    %c7 = arith.constant 7 : index
    %c0_92 = arith.constant 0 : index
    %c0_93 = arith.constant 0 : index
    %306 = vector.load %arg9[%c7, %c0_92, %c0_93] : memref<8x8x128xf32, #tpu.memory_space<vmem>>, vector<1x8x128xf32>
    %307 = vector.shape_cast %306 : vector<1x8x128xf32> to vector<8x128xf32>
    %c0_94 = arith.constant 0 : index
    %c896 = arith.constant 896 : index
    %308 = vector.load %arg6[%c0_94, %c896] : memref<8x1024xf32, #tpu.memory_space<vmem>>, vector<8x128xf32>
    tpu.vector_store %arg6[%c0_94, %c896], %307 {strides = array<i32>} : memref<8x1024xf32, #tpu.memory_space<vmem>>, vector<8x128xf32>,
    %c0_95 = arith.constant 0 : index
    %c0_96 = arith.constant 0 : index
    %309 = vector.load %arg7[%c0_95, %c0_96] : memref<8x128xf32, #tpu.memory_space<vmem>>, vector<8x128xf32>
    tpu.vector_store %arg7[%c0_95, %c0_96], %280 {strides = array<i32>} : memref<8x128xf32, #tpu.memory_space<vmem>>, vector<8x128xf32>,
    return
  }
  func.func @transform_0(%arg0: i32) -> (i32, i32, i32) {
    %c0_i32 = arith.constant 0 : i32
    %c0_i32_0 = arith.constant 0 : i32
    %c0_i32_1 = arith.constant 0 : i32
    return %c0_i32, %arg0, %c0_i32_0 : i32, i32, i32
  }
  func.func @transform_1(%arg0: i32) -> (i32, i32) {
    %c0_i32 = arith.constant 0 : i32
    %c0_i32_0 = arith.constant 0 : i32
    %c0_i32_1 = arith.constant 0 : i32
    return %c0_i32, %c0_i32_0 : i32, i32
  }
  func.func @transform_2(%arg0: i32) -> (i32, i32) {
    %c0_i32 = arith.constant 0 : i32
    %c0_i32_0 = arith.constant 0 : i32
    %c0_i32_1 = arith.constant 0 : i32
    return %c0_i32, %c0_i32_0 : i32, i32
  }
  func.func @transform_3(%arg0: i32) -> (i32, i32) {
    %c0_i32 = arith.constant 0 : i32
    %c0_i32_0 = arith.constant 0 : i32
    %c0_i32_1 = arith.constant 0 : i32
    return %c0_i32, %c0_i32_0 : i32, i32
  }
  func.func @transform_4(%arg0: i32) -> (i32, i32) {
    %c0_i32 = arith.constant 0 : i32
    %c0_i32_0 = arith.constant 0 : i32
    %c0_i32_1 = arith.constant 0 : i32
    return %c0_i32, %c0_i32_0 : i32, i32
  }
  func.func @transform_5(%arg0: i32) -> (i32, i32) {
    %c0_i32 = arith.constant 0 : i32
    %c0_i32_0 = arith.constant 0 : i32
    return %arg0, %c0_i32 : i32, i32
  }
  func.func @transform_6(%arg0: i32) -> (i32, i32) {
    %c0_i32 = arith.constant 0 : i32
    %c0_i32_0 = arith.constant 0 : i32
    return %arg0, %c0_i32 : i32, i32
  }
}

</mosaic_0001>

<bundles_post_ra>
// kernel: encoder_forward.1
= control target key start
LH: loop header
LB: loop body
LE: loop exit
PB: predicated region body
PF: predicated region fallthrough
CT: control target
= control target key end

     0   :  { %v2911_v3 = vmov 0.0   ;;  %vm2913_vm0 = vmmov 0   ;;  %s3717_s1 = inlined_call_operand.vmem [shape: f32[128,384], index: 1, kind: input, shape index: {}]   ;;  %s3718_s0 = inlined_call_operand.vmem [shape: f32[8,8,128], index: 0, kind: input, shape index: {}]   ;;  %s3719_s2 = inlined_call_operand.vmem [shape: f32[128,384], index: 2, kind: input, shape index: {}]   ;;  %s3720_s3 = inlined_call_operand.vmem [shape: f32[1,384], index: 3, kind: input, shape index: {}]   ;;  %s3721_s4 = inlined_call_operand.vmem [shape: f32[1,128], index: 4, kind: input, shape index: {}]   ;;  %s3722_s5 = inlined_call_operand.vmem [shape: f32[8,1024], index: 5, kind: output, shape index: {0}]   ;;  %s3723_s6 = inlined_call_operand.vmem [shape: f32[8,128], index: 6, kind: output, shape index: {1}]  }
   0x1   :  { %v31_v0 = vld [vmem:[%s3717_s1 + $0x8] sm:$0xff]  ;;  %v34_v1 = vld [vmem:[%s3717_s1 + $0x20] sm:$0xff]  ;;  %159 = vmatprep.mubr.f32.mxu0 %v2911_v3  ;;  %v33_v5 = vld [vmem:[%s3717_s1 + $0x18] sm:$0xff] }
   0x2   :  { %v30_v2 = vld [vmem:[%s3717_s1] sm:$0xff]  ;;  %v2284_v4 = vpack.c.bf16 %v34_v1, %v31_v0  ;;  %v37_v6 = vld [vmem:[%s3717_s1 + $0x38] sm:$0xff]  ;;  %v40_v7 = vld [vmem:[%s3717_s1 + $0x50] sm:$0xff] }
   0x3   :  { %v2286_v8 = vpack.c.bf16 %v33_v5, %v30_v2  ;;  %v2288_v9 = vpack.c.bf16 %v40_v7, %v37_v6  ;;  %v36_v10 = vld [vmem:[%s3717_s1 + $0x30] sm:$0xff]  ;;  %v39_v11 = vld [vmem:[%s3717_s1 + $0x48] sm:$0xff]  ;;  %v46_v13 = vld [vmem:[%s3717_s1 + $0x80] sm:$0xff] }
   0x4   :  { %v43_v12 = vld [vmem:[%s3717_s1 + $0x68] sm:$0xff]  ;;  %2285 = vmatprep.subr.bf16.mxu0 %v2284_v4  ;;  %v2290_v14 = vpack.c.bf16 %v39_v11, %v36_v10  ;;  %v42_v16 = vld [vmem:[%s3717_s1 + $0x60] sm:$0xff]  ;;  %v45_v17 = vld [vmem:[%s3717_s1 + $0x78] sm:$0xff] }
   0x5   :  { %2287 = vmatpush1.bf16.msra.mxu0 %v2286_v8  ;;  %v2292_v15 = vpack.c.bf16 %v46_v13, %v43_v12  ;;  %v49_v18 = vld [vmem:[%s3717_s1 + $0x98] sm:$0xff]  ;;  %v52_v19 = vld [vmem:[%s3717_s1 + $0xb0] sm:$0xff]  ;;  %v2294_v20 = vpack.c.bf16 %v45_v17, %v42_v16  ;;  %v51_v23 = vld [vmem:[%s3717_s1 + $0xa8] sm:$0xff] }
   0x6   :  { %2289 = vmatprep.subr.bf16.mxu0 %v2288_v9  ;;  %v48_v21 = vld [vmem:[%s3717_s1 + $0x90] sm:$0xff]  ;;  %v2296_v22 = vpack.c.bf16 %v52_v19, %v49_v18  ;;  %v35_v25 = vld [vmem:[%s3717_s1 + $0x28] sm:$0xff]  ;;  %v58_v27 = vld [vmem:[%s3717_s1 + $0xe0] sm:$0xff] }
   0x7   :  { %v32_v24 = vld [vmem:[%s3717_s1 + $0x10] sm:$0xff]  ;;  %v55_v26 = vld [vmem:[%s3717_s1 + $0xc8] sm:$0xff]  ;;  %v38_v29 = vld [vmem:[%s3717_s1 + $0x40] sm:$0xff]  ;;  %v2298_v31 = vpack.c.bf16 %v51_v23, %v48_v21 }
   0x8   :  { %v2316_v28 = vpack.c.bf16 %v35_v25, %v32_v24  ;;  %v41_v30 = vld [vmem:[%s3717_s1 + $0x58] sm:$0xff]  ;;  %v54_v32 = vld [vmem:[%s3717_s1 + $0xc0] sm:$0xff]  ;;  %v2300_v34 = vpack.c.bf16 %v58_v27, %v55_v26  ;;  %v44_v37 = vld [vmem:[%s3717_s1 + $0x70] sm:$0xff] }
   0x9   :  { %2291 = vmatpush1.bf16.msra.mxu0 %v2290_v14  ;;  %v2320_v33 = vpack.c.bf16 %v41_v30, %v38_v29  ;;  %v57_v35 = vld [vmem:[%s3717_s1 + $0xd8] sm:$0xff]  ;;  %v3025_v36 = vld [vmem:[%s3718_s0] sm:$0xff]  ;;  %v64_v39 = vld [vmem:[%s3717_s1 + $0x110] sm:$0xff] }
   0xa   :  { %2293 = vmatprep.subr.bf16.mxu0 %v2292_v15  ;;  %2317 = vmatprep.subr.bf16.mxu1 %v2316_v28  ;;  %v61_v38 = vld [vmem:[%s3717_s1 + $0xf8] sm:$0xff]  ;;  %v47_v40 = vld [vmem:[%s3717_s1 + $0x88] sm:$0xff]  ;;  %v2302_v42 = vpack.c.bf16 %v57_v35, %v54_v32  ;;  %v50_v43 = vld [vmem:[%s3717_s1 + $0xa0] sm:$0xff] }
   0xb   :  { %2319 = vmatpush3.bf16.msra.mxu1 %v2316_v28  ;;  %1992 = vmatprep.mubr.f32.mxu1 %v3025_v36  ;;  %v2324_v41 = vpack.c.bf16 %v47_v40, %v44_v37  ;;  %v53_v44 = vld [vmem:[%s3717_s1 + $0xb8] sm:$0xff]  ;;  %v2304_v45 = vpack.c.bf16 %v64_v39, %v61_v38  ;;  %v60_v46 = vld [vmem:[%s3717_s1 + $0xf0] sm:$0xff]  ;;  %v63_v47 = vld [vmem:[%s3717_s1 + $0x108] sm:$0xff]  ;;  %v2912_v40 = vmov 0.0|0.0  }
   0xc   :  { %2321 = vmatprep.subr.bf16.mxu1 %v2320_v33  ;;  %v67_v48 = vld [vmem:[%s3717_s1 + $0x128] sm:$0xff]  ;;  %v70_v49 = vld [vmem:[%s3717_s1 + $0x140] sm:$0xff]  ;;  %v2328_v50 = vpack.c.bf16 %v53_v44, %v50_v43  ;;  %v56_v51 = vld [vmem:[%s3717_s1 + $0xd0] sm:$0xff]  ;;  %v2306_v53 = vpack.c.bf16 %v63_v47, %v60_v46 }
   0xd   :  { %2295 = vmatpush1.bf16.msra.mxu0 %v2294_v20  ;;  %v59_v52 = vld [vmem:[%s3717_s1 + $0xe8] sm:$0xff]  ;;  %v2308_v54 = vpack.c.bf16 %v70_v49, %v67_v48  ;;  %v66_v55 = vld [vmem:[%s3717_s1 + $0x120] sm:$0xff]  ;;  %v69_v56 = vld [vmem:[%s3717_s1 + $0x138] sm:$0xff] }
   0xe   :  { %2297 = vmatprep.subr.bf16.mxu0 %v2296_v22  ;;  %v73_v57 = vld [vmem:[%s3717_s1 + $0x158] sm:$0xff]  ;;  %v76_v58 = vld [vmem:[%s3717_s1 + $0x170] sm:$0xff]  ;;  %v2332_v59 = vpack.c.bf16 %v59_v52, %v56_v51  ;;  %v62_v60 = vld [vmem:[%s3717_s1 + $0x100] sm:$0xff]  ;;  %v2310_v62 = vpack.c.bf16 %v69_v56, %v66_v55 }
   0xf   :  { %2323 = vmatpush3.bf16.msra.mxu1 %v2320_v33  ;;  %v65_v61 = vld [vmem:[%s3717_s1 + $0x118] sm:$0xff]  ;;  %v2312_v63 = vpack.c.bf16 %v76_v58, %v73_v57  ;;  %v72_v0 = vld [vmem:[%s3717_s1 + $0x150] sm:$0xff]  ;;  %v75_v1 = vld [vmem:[%s3717_s1 + $0x168] sm:$0xff] }
  0x10   :  { %2325 = vmatprep.subr.bf16.mxu1 %v2324_v41  ;;  %v338_v2 = vld [vmem:[%s3719_s2 + $0x8] sm:$0xff]  ;;  %v341_v4 = vld [vmem:[%s3719_s2 + $0x20] sm:$0xff]  ;;  %v2336_v5 = vpack.c.bf16 %v65_v61, %v62_v60  ;;  %v68_v6 = vld [vmem:[%s3717_s1 + $0x130] sm:$0xff]  ;;  %v2314_v8 = vpack.c.bf16 %v75_v1, %v72_v0 }
  0x11   :  { %2299 = vmatpush1.bf16.msra.mxu0 %v2298_v31  ;;  %v71_v7 = vld [vmem:[%s3717_s1 + $0x148] sm:$0xff]  ;;  %v3100_v9 = vpack.c.bf16 %v341_v4, %v338_v2  ;;  %v337_v10 = vld [vmem:[%s3719_s2] sm:$0xff]  ;;  %v340_v11 = vld [vmem:[%s3719_s2 + $0x18] sm:$0xff] }
  0x12   :  { %2301 = vmatprep.subr.bf16.mxu0 %v2300_v34  ;;  %v344_v12 = vld [vmem:[%s3719_s2 + $0x38] sm:$0xff]  ;;  %v347_v13 = vld [vmem:[%s3719_s2 + $0x50] sm:$0xff]  ;;  %v2340_v14 = vpack.c.bf16 %v71_v7, %v68_v6  ;;  %v74_v15 = vld [vmem:[%s3717_s1 + $0x160] sm:$0xff]  ;;  %v3120_v17 = vpack.c.bf16 %v340_v11, %v337_v10 }
  0x13   :  { %2327 = vmatpush3.bf16.msra.mxu1 %v2324_v41  ;;  %v77_v16 = vld [vmem:[%s3717_s1 + $0x178] sm:$0xff]  ;;  %v3123_v18 = vpack.c.bf16 %v347_v13, %v344_v12  ;;  %v343_v19 = vld [vmem:[%s3719_s2 + $0x30] sm:$0xff]  ;;  %v346_v20 = vld [vmem:[%s3719_s2 + $0x48] sm:$0xff] }
  0x14   :  { %2329 = vmatprep.subr.bf16.mxu1 %v2328_v50  ;;  %v350_v21 = vld [vmem:[%s3719_s2 + $0x68] sm:$0xff]  ;;  %v353_v22 = vld [vmem:[%s3719_s2 + $0x80] sm:$0xff]  ;;  %v2344_v23 = vpack.c.bf16 %v77_v16, %v74_v15  ;;  %v3143_v25 = vpack.c.bf16 %v346_v20, %v343_v19  ;;  %v352_v28 = vld [vmem:[%s3719_s2 + $0x78] sm:$0xff] }
  0x15   :  { %2303 = vmatpush1.bf16.msra.mxu0 %v2302_v42  ;;  %v23_v24 = vld [vmem:[%s3718_s0 + $0x8] sm:$0xff]  ;;  %v3146_v26 = vpack.c.bf16 %v353_v22, %v350_v21  ;;  %v349_v27 = vld [vmem:[%s3719_s2 + $0x60] sm:$0xff]  ;;  %v356_v29 = vld [vmem:[%s3719_s2 + $0x98] sm:$0xff] }
  0x16   :  { %2305 = vmatprep.subr.bf16.mxu0 %v2304_v45  ;;  %v359_v30 = vld [vmem:[%s3719_s2 + $0xb0] sm:$0xff]  ;;  %v342_v32 = vld [vmem:[%s3719_s2 + $0x28] sm:$0xff]  ;;  %v3171_v34 = vpack.c.bf16 %v352_v28, %v349_v27  ;;  %v365_v39 = vld [vmem:[%s3719_s2 + $0xe0] sm:$0xff] }
  0x17   :  { %2331 = vmatpush3.bf16.msra.mxu1 %v2328_v50  ;;  %v339_v31 = vld [vmem:[%s3719_s2 + $0x10] sm:$0xff]  ;;  %v3174_v35 = vpack.c.bf16 %v359_v30, %v356_v29  ;;  %v358_v37 = vld [vmem:[%s3719_s2 + $0xa8] sm:$0xff]  ;;  %v345_v42 = vld [vmem:[%s3719_s2 + $0x40] sm:$0xff] }
  0x18   :  { %2333 = vmatprep.subr.bf16.mxu1 %v2332_v59  ;;  %v24_v33 = vld [vmem:[%s3718_s0 + $0x10] sm:$0xff]  ;;  %v362_v38 = vld [vmem:[%s3719_s2 + $0xc8] sm:$0xff]  ;;  %v3189_v41 = vpack.c.bf16 %v342_v32, %v339_v31  ;;  %v348_v43 = vld [vmem:[%s3719_s2 + $0x58] sm:$0xff] }
  0x19   :  { %2307 = vmatpush1.bf16.msra.mxu0 %v2306_v53  ;;  %v25_v44 = vld [vmem:[%s3718_s0 + $0x18] sm:$0xff]  ;;  %v3205_v46 = vpack.c.bf16 %v365_v39, %v362_v38  ;;  %v361_v47 = vld [vmem:[%s3719_s2 + $0xc0] sm:$0xff]  ;;  %v371_v50 = vld [vmem:[%s3719_s2 + $0x110] sm:$0xff]  ;;  %v3220_v51 = vpack.c.bf16 %v348_v43, %v345_v42 }
  0x1a   :  { %2309 = vmatprep.subr.bf16.mxu0 %v2308_v54  ;;  %v364_v48 = vld [vmem:[%s3719_s2 + $0xd8] sm:$0xff]  ;;  %v351_v52 = vld [vmem:[%s3719_s2 + $0x70] sm:$0xff]  ;;  %v354_v53 = vld [vmem:[%s3719_s2 + $0x88] sm:$0xff] }
  0x1b   :  { %2335 = vmatpush3.bf16.msra.mxu1 %v2332_v59  ;;  %v368_v49 = vld [vmem:[%s3719_s2 + $0xf8] sm:$0xff]  ;;  %v26_v54 = vld [vmem:[%s3718_s0 + $0x20] sm:$0xff]  ;;  %v3234_v55 = vpack.c.bf16 %v364_v48, %v361_v47  ;;  %v367_v57 = vld [vmem:[%s3719_s2 + $0xf0] sm:$0xff]  ;;  %v3252_v61 = vpack.c.bf16 %v354_v53, %v351_v52 }
  0x1c   :  { %2337 = vmatprep.subr.bf16.mxu1 %v2336_v5  ;;  %v3237_v56 = vpack.c.bf16 %v371_v50, %v368_v49  ;;  %v370_v58 = vld [vmem:[%s3719_s2 + $0x108] sm:$0xff]  ;;  %v377_v60 = vld [vmem:[%s3719_s2 + $0x140] sm:$0xff]  ;;  %v28_v2 = vld [vmem:[%s3718_s0 + $0x30] sm:$0xff] }
  0x1d   :  { %2311 = vmatpush1.bf16.msra.mxu0 %v2310_v62  ;;  %v374_v59 = vld [vmem:[%s3719_s2 + $0x128] sm:$0xff]  ;;  %v357_v62 = vld [vmem:[%s3719_s2 + $0xa0] sm:$0xff]  ;;  %v3266_v1 = vpack.c.bf16 %v370_v58, %v367_v57  ;;  %v376_v6 = vld [vmem:[%s3719_s2 + $0x138] sm:$0xff] }
  0x1e   :  { %2313 = vmatprep.subr.bf16.mxu0 %v2312_v63  ;;  %v360_v63 = vld [vmem:[%s3719_s2 + $0xb8] sm:$0xff]  ;;  %v27_v0 = vld [vmem:[%s3718_s0 + $0x28] sm:$0xff]  ;;  %v3272_v4 = vpack.c.bf16 %v377_v60, %v374_v59  ;;  %v363_v11 = vld [vmem:[%s3719_s2 + $0xd0] sm:$0xff] }
  0x1f   :  { %2339 = vmatpush3.bf16.msra.mxu1 %v2336_v5  ;;  %v373_v5 = vld [vmem:[%s3719_s2 + $0x120] sm:$0xff]  ;;  %v380_v7 = vld [vmem:[%s3719_s2 + $0x158] sm:$0xff]  ;;  %v3287_v10 = vpack.c.bf16 %v360_v63, %v357_v62  ;;  %v366_v12 = vld [vmem:[%s3719_s2 + $0xe8] sm:$0xff] }
  0x20   :  { %2341 = vmatprep.subr.bf16.mxu1 %v2340_v14  ;;  %v3298_v13 = vpack.c.bf16 %v376_v6, %v373_v5  ;;  %v379_v16 = vld [vmem:[%s3719_s2 + $0x150] sm:$0xff]  ;;  %v382_v19 = vld [vmem:[%s3719_s2 + $0x168] sm:$0xff]  ;;  %v3313_v20 = vpack.c.bf16 %v366_v12, %v363_v11  ;;  %v369_v21 = vld [vmem:[%s3719_s2 + $0x100] sm:$0xff] }
  0x21   :  { %2315 = vmatpush1.bf16.msra.mxu0 %v2314_v8  ;;  %v383_v8 = vld [vmem:[%s3719_s2 + $0x170] sm:$0xff]  ;;  %v372_v22 = vld [vmem:[%s3719_s2 + $0x118] sm:$0xff]  ;;  %v378_v28 = vld [vmem:[%s3719_s2 + $0x148] sm:$0xff] }
  0x22   :  { %2349 = vmatprep.subr.bf16.mxu0 %v3100_v9  ;;  %v3304_v15 = vpack.c.bf16 %v383_v8, %v380_v7  ;;  %v375_v27 = vld [vmem:[%s3719_s2 + $0x130] sm:$0xff]  ;;  %v381_v30 = vld [vmem:[%s3719_s2 + $0x160] sm:$0xff]  ;;  %v384_v31 = vld [vmem:[%s3719_s2 + $0x178] sm:$0xff] }
  0x23   :  { %2343 = vmatpush3.bf16.msra.mxu1 %v2340_v14  ;;  %v29_v14 = vld [vmem:[%s3718_s0 + $0x38] sm:$0xff]  ;;  %v3343_v29 = vpack.c.bf16 %v378_v28, %v375_v27  ;;  %v3357_v32 = vpack.c.bf16 %v384_v31, %v381_v30  ;;  %v78_v38 = vld [vmem:[%s3720_s3] sm:$0x7] }
  0x24   :  { %160 = vmatmul.mubr.f32.vlgmr.msra.gmra.mrb[0].mxu0 %v3025_v36  ;;  %2345 = vmatprep.subr.bf16.mxu1 %v2344_v23  ;;  %v355_v36 = vld [vmem:[%s3719_s2 + $0x90] sm:$0xff]  ;;  %v3421_v27 = vld [vmem:[%s3721_s4] ss:$0 sm:$0xff] }
  0x25   :  { %2351 = vmatpush1.bf16.msra.mxu0 %v3120_v17  ;;  %165 = vmatprep.mubr.f32.mxu0 %v2911_v3  ;;  %v3202_v45 = vpack.c.bf16 %v358_v37, %v355_v36 }
  0x26   :  { %2353 = vmatprep.subr.bf16.mxu0 %v3123_v18 }
  0x27   :  { %2347 = vmatpush3.bf16.msra.mxu1 %v2344_v23  ;;  %v3326_v23 = vpack.c.bf16 %v382_v19, %v379_v16 }
  0x28   :  { %166 = vmatmul.mubr.f32.gmra.mrb[2].mxu0 %v23_v24  ;;  %2380 = vmatprep.subr.bf16.mxu1 %v2912_v40 }
  0x29   :  { %2355 = vmatpush1.bf16.msra.mxu0 %v3143_v25  ;;  %171 = vmatprep.mubr.f32.mxu0 %v2911_v3 }
  0x2a   :  { %2357 = vmatprep.subr.bf16.mxu0 %v3146_v26  ;;  %1993 = vmatmul.mubr.f32.vlgmr.msra.gmra.mrb[0].mxu1 %v23_v24  ;;  %v3330_v24 = vpack.c.bf16 %v372_v22, %v369_v21 }
  0x2b   :  { %2382 = vmatpush3.bf16.msra.mxu1 %v3189_v41  ;;  %1995 = vmatprep.mubr.f32.mxu1 %v24_v33 }
  0x2c   :  { %172 = vmatmul.mubr.f32.gmra.mrb[4].mxu0 %v24_v33  ;;  %2383 = vmatprep.subr.bf16.mxu1 %v2912_v40  ;;  %v80_v33 = vlaneseq }
  0x2d   :  { %2359 = vmatpush1.bf16.msra.mxu0 %v3171_v34  ;;  %177 = vmatprep.mubr.f32.mxu0 %v2911_v3 }
  0x2e   :  { %2361 = vmatprep.subr.bf16.mxu0 %v3174_v35  ;;  %1996 = vmatmul.mubr.f32.gmra.mrb[2].mxu1 %v25_v44  ;;  %v81_v36 = vshrl.u32 %v80_v33, 7 }
  0x2f   :  { %2385 = vmatpush3.bf16.msra.mxu1 %v3220_v51  ;;  %1998 = vmatprep.mubr.f32.mxu1 %v26_v54 }
  0x30   :  { %178 = vmatmul.mubr.f32.gmra.mrb[6].mxu0 %v25_v44  ;;  %2386 = vmatprep.subr.bf16.mxu1 %v2912_v40  ;;  %v90_v37 = vsub.s32 2, %v81_v36  ;;  %v82_v63 = vsub.s32 0, %v81_v36  ;;  %v86_v6 = vsub.s32 1, %v81_v36 }
  0x31   :  { %2363 = vmatpush1.bf16.msra.mxu0 %v3202_v45  ;;  %183 = vmatprep.mubr.f32.mxu0 %v2911_v3 }
  0x32   :  { %2365 = vmatprep.subr.bf16.mxu0 %v3205_v46  ;;  %1999 = vmatmul.mubr.f32.gmra.mrb[4].mxu1 %v27_v0  ;;  %v91_v39 = vrot.slane %v78_v38, %v90_v37  ;;  %v3415_v11 = vrot.slane %v78_v38, %v86_v6 }
  0x33   :  { %2388 = vmatpush3.bf16.msra.mxu1 %v3252_v61  ;;  %2001 = vmatprep.mubr.f32.mxu1 %v28_v2 }
  0x34   :  { %184 = vmatmul.mubr.f32.gmra.mrb[8].mxu0 %v26_v54  ;;  %2389 = vmatprep.subr.bf16.mxu1 %v2912_v40 }
  0x35   :  { %2367 = vmatpush1.bf16.msra.mxu0 %v3234_v55  ;;  %189 = vmatprep.mubr.f32.mxu0 %v2911_v3 }
  0x36   :  { %2369 = vmatprep.subr.bf16.mxu0 %v3237_v56  ;;  %2002 = vmatmul.mubr.f32.gmra.mrb[6].mxu1 %v29_v14 }
  0x37   :  { %2391 = vmatpush3.bf16.msra.mxu1 %v3287_v10  ;;  %2036 = vmatprep.mubr.msk.f32.mxu1 %vm2913_vm0, %v2911_v3 }
  0x38   :  { %190 = vmatmul.mubr.f32.gmra.mrb[10].mxu0 %v27_v0  ;;  %2392 = vmatprep.subr.bf16.mxu1 %v2912_v40  ;;  %v3412_v0 = vrot.slane %v78_v38, %v82_v63 }
  0x39   :  { %2371 = vmatpush1.bf16.msra.mxu0 %v3266_v1  ;;  %195 = vmatprep.mubr.f32.mxu0 %v2911_v3 }
  0x3a   :  { %2373 = vmatprep.subr.bf16.mxu0 %v3272_v4 }
  0x3b   :  { %2394 = vmatpush3.bf16.msra.mxu1 %v3313_v20 }
  0x3c   :  { %196 = vmatmul.mubr.f32.gmra.mrb[12].mxu0 %v28_v2  ;;  %2395 = vmatprep.subr.bf16.mxu1 %v2912_v40 }
  0x3d   :  { %2375 = vmatpush1.bf16.msra.mxu0 %v3298_v13  ;;  %201 = vmatprep.mubr.f32.mxu0 %v2911_v3 }
  0x3e   :  { %2377 = vmatprep.subr.bf16.mxu0 %v3304_v15 }
  0x3f   :  { %2397 = vmatpush3.bf16.msra.mxu1 %v3330_v24 }
  0x40   :  { %202 = vmatmul.mubr.f32.gmra.mrb[14].mxu0 %v29_v14  ;;  %2398 = vmatprep.subr.bf16.mxu1 %v2912_v40 }
  0x41   :  { %2379 = vmatpush1.bf16.msra.mxu0 %v3326_v23  ;;  %462 = vmatprep.mubr.f32.mxu0 %v2911_v3 }
  0x42   :  { %2405 = vmatprep.subr.bf16.mxu0 %v3100_v9 }
  0x43   :  { %2400 = vmatpush3.bf16.msra.mxu1 %v3343_v29 }
  0x44   :  { %463 = vmatmul.mubr.f32.vlgmr.msra.gmra.mrb[0].mxu0 %v2911_v3  ;;  %2401 = vmatprep.subr.bf16.mxu1 %v2912_v40 }
  0x45   :  { %2407 = vmatpush1.bf16.msra.mxu0 %v3120_v17  ;;  %631 = vmatprep.mubr.f32.mxu0 %v2911_v3 }
  0x46   :  { %2409 = vmatprep.subr.bf16.mxu0 %v3123_v18 }
  0x47   :  { %2403 = vmatpush3.bf16.msra.mxu1 %v3357_v32 }
  0x48   :  { %2436 = vmatprep.subr.bf16.mxu1 %v2912_v40 }
  0x49   :  { %2411 = vmatpush1.bf16.msra.mxu0 %v3143_v25 }
  0x4a   :  { %2413 = vmatprep.subr.bf16.mxu0 %v3146_v26  ;;  %2037 = vmatmul.mubr.f32.vlgmr.msra.gmra.mrb[8].mxu1 %v2911_v3 }
  0x4b   :  { %2438 = vmatpush3.bf16.msra.mxu1 %v3189_v41  ;;  %2071 = vmatprep.mubr.msk.f32.mxu1 %vm2913_vm0, %v2911_v3 }
  0x4c   :  { %2439 = vmatprep.subr.bf16.mxu1 %v2912_v40 }
  0x4d   :  { %2415 = vmatpush1.bf16.msra.mxu0 %v3171_v34 }
  0x4e   :  { %2417 = vmatprep.subr.bf16.mxu0 %v3174_v35 }
  0x4f   :  { %2441 = vmatpush3.bf16.msra.mxu1 %v3220_v51 }
  0x50   :  { %2442 = vmatprep.subr.bf16.mxu1 %v2912_v40 }
  0x51   :  { %2419 = vmatpush1.bf16.msra.mxu0 %v3202_v45 }
  0x52   :  { %2421 = vmatprep.subr.bf16.mxu0 %v3205_v46 }
  0x53   :  { %2444 = vmatpush3.bf16.msra.mxu1 %v3252_v61 }
  0x54   :  { %2445 = vmatprep.subr.bf16.mxu1 %v2912_v40 }
  0x55   :  { %2423 = vmatpush1.bf16.msra.mxu0 %v3234_v55 }
  0x56   :  { %2425 = vmatprep.subr.bf16.mxu0 %v3237_v56 }
  0x57   :  { %2447 = vmatpush3.bf16.msra.mxu1 %v3287_v10 }
  0x58   :  { %2448 = vmatprep.subr.bf16.mxu1 %v2912_v40 }
  0x59   :  { %2427 = vmatpush1.bf16.msra.mxu0 %v3266_v1 }
  0x5a   :  { %2429 = vmatprep.subr.bf16.mxu0 %v3272_v4 }
  0x5b   :  { %2450 = vmatpush3.bf16.msra.mxu1 %v3313_v20 }
  0x5c   :  { %2451 = vmatprep.subr.bf16.mxu1 %v2912_v40 }
  0x5d   :  { %2431 = vmatpush1.bf16.msra.mxu0 %v3298_v13 }
  0x5e   :  { %2433 = vmatprep.subr.bf16.mxu0 %v3304_v15 }
  0x5f   :  { %2453 = vmatpush3.bf16.msra.mxu1 %v3330_v24 }
  0x60   :  { %2454 = vmatprep.subr.bf16.mxu1 %v2912_v40 }
  0x61   :  { %2435 = vmatpush1.bf16.msra.mxu0 %v3326_v23 }
  0x62   :  { %2461 = vmatprep.subr.bf16.mxu0 %v3100_v9 }
  0x63   :  { %2456 = vmatpush3.bf16.msra.mxu1 %v3343_v29 }
  0x64   :  { %2457 = vmatprep.subr.bf16.mxu1 %v2912_v40 }
  0x67   :  { %2459 = vmatpush3.bf16.msra.mxu1 %v3357_v32 }
  0x68   :  { %2492 = vmatprep.subr.bf16.mxu1 %v2912_v40 }
  0xfd   :  { %v1994_v42 = vpop.f32.mrb[0].mxu1 }
  0xfe   :  { %v3398_v43 = vadd.f32 %v1994_v42, %v91_v39  ;;  %v274_v44 = vpop.f32.mrb[1].mxu1 }
  0xff   :  { %v275_v33 = vadd.f32 %v274_v44, %v91_v39 }
 0x101   :  { %v1997_v47 = vpop.f32.mrb[2].mxu1 }
 0x102   :  { %v3400_v48 = vadd.f32 %v1997_v47, %v91_v39  ;;  %v284_v49 = vpop.f32.mrb[3].mxu1 }
 0x103   :  { %v3402_v50 = vadd.f32 %v284_v49, %v91_v39 }
 0x105   :  { %v2000_v52 = vpop.f32.mrb[4].mxu1 }
 0x106   :  { %v3404_v53 = vadd.f32 %v2000_v52, %v91_v39  ;;  %v294_v54 = vpop.f32.mrb[5].mxu1 }
 0x107   :  { %v3406_v57 = vadd.f32 %v294_v54, %v91_v39 }
 0x109   :  { %v2003_v58 = vpop.f32.mrb[6].mxu1 }
 0x10a   :  { %v3408_v59 = vadd.f32 %v2003_v58, %v91_v39  ;;  %v304_v60 = vpop.f32.mrb[7].mxu1 }
 0x10b   :  { %v3410_v62 = vadd.f32 %v304_v60, %v91_v39 }
 0x117   :  { %v464_v2 = vpop.f32.mrb[0].mxu0 }
 0x118   :  { %v2796_v5 = vadd.f32 %v464_v2, %v3412_v0  ;;  %v466_v7 = vpop.f32.mrb[1].mxu0 }
 0x119   :  { %v2797_v12 = vadd.f32 %v466_v7, %v3415_v11 }
 0x11a   :  { %v1784_v8 = vmul.f32 -1.442695, %v2796_v5 }
 0x11b   :  { %v1785_v19 = vmul.f32 -1.442695, %v2797_v12 }
 0x11c   :  { %2831 = vpow2.f32 %v1784_v8 }
 0x11d   :  { %v535_v14 = vpop.f32.mrb[8].mxu1  ;;  %2833 = vpow2.f32 %v1785_v19 }
 0x11e   :  { %v2038_v16 = vpop.f32.mrb[9].mxu1  ;;  %v553_v28 = vadd.f32 %v3421_v27, %v535_v14 }
 0x126   :  { %v2832_v21 = vpop.eup %2831 }
 0x127   :  { %v543_v22 = vadd.f32 1.0, %v2832_v21  ;;  %v2834_v30 = vpop.eup %2833 }
 0x128   :  { %v550_v37 = vadd.f32 1.0, %v2834_v30 }
 0x129   :  { %2835 = vrcp.f32 %v543_v22 }
 0x133   :  { %v2836_v31 = vpop.eup %2835 }
 0x134   :  { %v554_v36 = vmul.f32 %v2836_v31, %v553_v28 }
 0x136   :  { %v555_v38 = vadd.f32 %v554_v36, %v275_v33 }
 0x138   :  { %2837 = vtanh.f32 %v555_v38 }
 0x139   :  { %2839 = vrcp.f32 %v550_v37 }
 0x142   :  { %v2838_v42 = vpop.eup %2837 }
 0x143   :  { %v557_v47 = vsub.f32 0.0, %v2838_v42  ;;  %v2840_v49 = vpop.eup %2839 }
 0x145   :  { %v558_v52 = vmul.f32 %v2840_v49, %v557_v47 }
 0x147   :  { %v3424_v54 = vadd.f32 %v2838_v42, %v558_v52 }
 0x149   :  { %632 = vmatmul.mubr.f32.vlgmr.msra.gmra.mrb[2].mxu0 %v3424_v54  ;;  %1752 = vst [vmem:[%s3722_s5] sm:$0xff] %v3424_v54  ;;  %2072 = vmatmul.mubr.f32.vlgmr.msra.gmra.mrb[10].mxu1 %v3424_v54 }
 0x14a   :  { %2463 = vmatpush1.bf16.msra.mxu0 %v3120_v17  ;;  %2494 = vmatpush3.bf16.msra.mxu1 %v3189_v41 }
 0x14b   :  { %2465 = vmatprep.subr.bf16.mxu0 %v3123_v18  ;;  %2495 = vmatprep.subr.bf16.mxu1 %v2912_v40 }
 0x14c   :  { %801 = vmatprep.mubr.f32.mxu0 %v2911_v3  ;;  %2106 = vmatprep.mubr.msk.f32.mxu1 %vm2913_vm0, %v2911_v3 }
 0x14e   :  { %2467 = vmatpush1.bf16.msra.mxu0 %v3143_v25  ;;  %2497 = vmatpush3.bf16.msra.mxu1 %v3220_v51 }
 0x14f   :  { %2469 = vmatprep.subr.bf16.mxu0 %v3146_v26  ;;  %2498 = vmatprep.subr.bf16.mxu1 %v2912_v40 }
 0x152   :  { %2471 = vmatpush1.bf16.msra.mxu0 %v3171_v34  ;;  %2500 = vmatpush3.bf16.msra.mxu1 %v3252_v61 }
 0x153   :  { %2473 = vmatprep.subr.bf16.mxu0 %v3174_v35  ;;  %2501 = vmatprep.subr.bf16.mxu1 %v2912_v40 }
 0x156   :  { %2475 = vmatpush1.bf16.msra.mxu0 %v3202_v45  ;;  %2503 = vmatpush3.bf16.msra.mxu1 %v3287_v10 }
 0x157   :  { %2477 = vmatprep.subr.bf16.mxu0 %v3205_v46  ;;  %2504 = vmatprep.subr.bf16.mxu1 %v2912_v40 }
 0x15a   :  { %2479 = vmatpush1.bf16.msra.mxu0 %v3234_v55  ;;  %2506 = vmatpush3.bf16.msra.mxu1 %v3313_v20 }
 0x15b   :  { %2481 = vmatprep.subr.bf16.mxu0 %v3237_v56  ;;  %2507 = vmatprep.subr.bf16.mxu1 %v2912_v40 }
 0x15e   :  { %2483 = vmatpush1.bf16.msra.mxu0 %v3266_v1  ;;  %2509 = vmatpush3.bf16.msra.mxu1 %v3330_v24 }
 0x15f   :  { %2485 = vmatprep.subr.bf16.mxu0 %v3272_v4  ;;  %2510 = vmatprep.subr.bf16.mxu1 %v2912_v40 }
 0x162   :  { %2487 = vmatpush1.bf16.msra.mxu0 %v3298_v13  ;;  %2512 = vmatpush3.bf16.msra.mxu1 %v3343_v29 }
 0x163   :  { %2489 = vmatprep.subr.bf16.mxu0 %v3304_v15  ;;  %2513 = vmatprep.subr.bf16.mxu1 %v2912_v40 }
 0x166   :  { %2491 = vmatpush1.bf16.msra.mxu0 %v3326_v23  ;;  %2515 = vmatpush3.bf16.msra.mxu1 %v3357_v32 }
 0x167   :  { %2517 = vmatprep.subr.bf16.mxu0 %v3100_v9  ;;  %2548 = vmatprep.subr.bf16.mxu1 %v2912_v40 }
 0x21c   :  { %v633_v39 = vpop.f32.mrb[2].mxu0  ;;  %v704_v44 = vpop.f32.mrb[10].mxu1 }
 0x21d   :  { %v2798_v58 = vadd.f32 %v633_v39, %v3412_v0  ;;  %v635_v60 = vpop.f32.mrb[3].mxu0  ;;  %v2073_v63 = vpop.f32.mrb[11].mxu1  ;;  %v722_v14 = vadd.f32 %v3421_v27, %v704_v44 }
 0x21e   :  { %v2799_v5 = vadd.f32 %v635_v60, %v3415_v11 }
 0x21f   :  { %v1786_v2 = vmul.f32 -1.442695, %v2798_v58 }
 0x220   :  { %v1787_v6 = vmul.f32 -1.442695, %v2799_v5 }
 0x221   :  { %2841 = vpow2.f32 %v1786_v2 }
 0x222   :  { %2843 = vpow2.f32 %v1787_v6 }
 0x22b   :  { %v2842_v7 = vpop.eup %2841 }
 0x22c   :  { %v712_v8 = vadd.f32 1.0, %v2842_v7  ;;  %v2844_v12 = vpop.eup %2843 }
 0x22d   :  { %v719_v22 = vadd.f32 1.0, %v2844_v12 }
 0x22e   :  { %2845 = vrcp.f32 %v712_v8 }
 0x238   :  { %v2846_v16 = vpop.eup %2845 }
 0x239   :  { %v723_v19 = vmul.f32 %v2846_v16, %v722_v14 }
 0x23b   :  { %v724_v21 = vadd.f32 %v723_v19, %v3398_v43 }
 0x23d   :  { %2847 = vtanh.f32 %v724_v21 }
 0x23e   :  { %2849 = vrcp.f32 %v719_v22 }
 0x247   :  { %v2848_v28 = vpop.eup %2847 }
 0x248   :  { %v726_v30 = vsub.f32 %v3424_v54, %v2848_v28  ;;  %v2850_v31 = vpop.eup %2849 }
 0x24a   :  { %v727_v33 = vmul.f32 %v2850_v31, %v726_v30 }
 0x24c   :  { %v3472_v36 = vadd.f32 %v2848_v28, %v727_v33 }
 0x24e   :  { %802 = vmatmul.mubr.f32.vlgmr.msra.gmra.mrb[4].mxu0 %v3472_v36  ;;  %1754 = vst [vmem:[%s3722_s5 + $0x8] sm:$0xff] %v3472_v36  ;;  %2107 = vmatmul.mubr.f32.vlgmr.msra.gmra.mrb[12].mxu1 %v3472_v36 }
 0x24f   :  { %2519 = vmatpush1.bf16.msra.mxu0 %v3120_v17  ;;  %2550 = vmatpush3.bf16.msra.mxu1 %v3189_v41 }
 0x250   :  { %2521 = vmatprep.subr.bf16.mxu0 %v3123_v18  ;;  %2551 = vmatprep.subr.bf16.mxu1 %v2912_v40 }
 0x251   :  { %971 = vmatprep.mubr.f32.mxu0 %v2911_v3  ;;  %2141 = vmatprep.mubr.msk.f32.mxu1 %vm2913_vm0, %v2911_v3 }
 0x253   :  { %2523 = vmatpush1.bf16.msra.mxu0 %v3143_v25  ;;  %2553 = vmatpush3.bf16.msra.mxu1 %v3220_v51 }
 0x254   :  { %2525 = vmatprep.subr.bf16.mxu0 %v3146_v26  ;;  %2554 = vmatprep.subr.bf16.mxu1 %v2912_v40 }
 0x257   :  { %2527 = vmatpush1.bf16.msra.mxu0 %v3171_v34  ;;  %2556 = vmatpush3.bf16.msra.mxu1 %v3252_v61 }
 0x258   :  { %2529 = vmatprep.subr.bf16.mxu0 %v3174_v35  ;;  %2557 = vmatprep.subr.bf16.mxu1 %v2912_v40 }
 0x25b   :  { %2531 = vmatpush1.bf16.msra.mxu0 %v3202_v45  ;;  %2559 = vmatpush3.bf16.msra.mxu1 %v3287_v10 }
 0x25c   :  { %2533 = vmatprep.subr.bf16.mxu0 %v3205_v46  ;;  %2560 = vmatprep.subr.bf16.mxu1 %v2912_v40 }
 0x25f   :  { %2535 = vmatpush1.bf16.msra.mxu0 %v3234_v55  ;;  %2562 = vmatpush3.bf16.msra.mxu1 %v3313_v20 }
 0x260   :  { %2537 = vmatprep.subr.bf16.mxu0 %v3237_v56  ;;  %2563 = vmatprep.subr.bf16.mxu1 %v2912_v40 }
 0x263   :  { %2539 = vmatpush1.bf16.msra.mxu0 %v3266_v1  ;;  %2565 = vmatpush3.bf16.msra.mxu1 %v3330_v24 }
 0x264   :  { %2541 = vmatprep.subr.bf16.mxu0 %v3272_v4  ;;  %2566 = vmatprep.subr.bf16.mxu1 %v2912_v40 }
 0x267   :  { %2543 = vmatpush1.bf16.msra.mxu0 %v3298_v13  ;;  %2568 = vmatpush3.bf16.msra.mxu1 %v3343_v29 }
 0x268   :  { %2545 = vmatprep.subr.bf16.mxu0 %v3304_v15  ;;  %2569 = vmatprep.subr.bf16.mxu1 %v2912_v40 }
 0x26b   :  { %2547 = vmatpush1.bf16.msra.mxu0 %v3326_v23  ;;  %2571 = vmatpush3.bf16.msra.mxu1 %v3357_v32 }
 0x26c   :  { %2573 = vmatprep.subr.bf16.mxu0 %v3100_v9  ;;  %2604 = vmatprep.subr.bf16.mxu1 %v2912_v40 }
 0x321   :  { %v803_v43 = vpop.f32.mrb[4].mxu0  ;;  %v874_v37 = vpop.f32.mrb[12].mxu1 }
 0x322   :  { %v2800_v38 = vadd.f32 %v803_v43, %v3412_v0  ;;  %v805_v42 = vpop.f32.mrb[5].mxu0  ;;  %v2108_v47 = vpop.f32.mrb[13].mxu1  ;;  %v892_v60 = vadd.f32 %v3421_v27, %v874_v37 }
 0x323   :  { %v2801_v52 = vadd.f32 %v805_v42, %v3415_v11 }
 0x324   :  { %v1788_v49 = vmul.f32 -1.442695, %v2800_v38 }
 0x325   :  { %v1789_v54 = vmul.f32 -1.442695, %v2801_v52 }
 0x326   :  { %2851 = vpow2.f32 %v1788_v49 }
 0x327   :  { %2853 = vpow2.f32 %v1789_v54 }
 0x330   :  { %v2852_v39 = vpop.eup %2851 }
 0x331   :  { %v882_v44 = vadd.f32 1.0, %v2852_v39  ;;  %v2854_v58 = vpop.eup %2853 }
 0x332   :  { %v889_v6 = vadd.f32 1.0, %v2854_v58 }
 0x333   :  { %2855 = vrcp.f32 %v882_v44 }
 0x33d   :  { %v2856_v63 = vpop.eup %2855 }
 0x33e   :  { %v893_v2 = vmul.f32 %v2856_v63, %v892_v60 }
 0x340   :  { %v894_v5 = vadd.f32 %v893_v2, %v3402_v50 }
 0x342   :  { %2857 = vtanh.f32 %v894_v5 }
 0x343   :  { %2859 = vrcp.f32 %v889_v6 }
 0x34c   :  { %v2858_v7 = vpop.eup %2857 }
 0x34d   :  { %v896_v8 = vsub.f32 %v3472_v36, %v2858_v7  ;;  %v2860_v12 = vpop.eup %2859 }
 0x34f   :  { %v897_v14 = vmul.f32 %v2860_v12, %v896_v8 }
 0x351   :  { %v3520_v16 = vadd.f32 %v2858_v7, %v897_v14 }
 0x353   :  { %972 = vmatmul.mubr.f32.vlgmr.msra.gmra.mrb[6].mxu0 %v3520_v16  ;;  %1756 = vst [vmem:[%s3722_s5 + $0x10] sm:$0xff] %v3520_v16  ;;  %2142 = vmatmul.mubr.f32.vlgmr.msra.gmra.mrb[14].mxu1 %v3520_v16 }
 0x354   :  { %2575 = vmatpush1.bf16.msra.mxu0 %v3120_v17  ;;  %2606 = vmatpush3.bf16.msra.mxu1 %v3189_v41 }
 0x355   :  { %2577 = vmatprep.subr.bf16.mxu0 %v3123_v18  ;;  %2607 = vmatprep.subr.bf16.mxu1 %v2912_v40 }
 0x356   :  { %1141 = vmatprep.mubr.f32.mxu0 %v2911_v3  ;;  %2176 = vmatprep.mubr.msk.f32.mxu1 %vm2913_vm0, %v2911_v3 }
 0x358   :  { %2579 = vmatpush1.bf16.msra.mxu0 %v3143_v25  ;;  %2609 = vmatpush3.bf16.msra.mxu1 %v3220_v51 }
 0x359   :  { %2581 = vmatprep.subr.bf16.mxu0 %v3146_v26  ;;  %2610 = vmatprep.subr.bf16.mxu1 %v2912_v40 }
 0x35c   :  { %2583 = vmatpush1.bf16.msra.mxu0 %v3171_v34  ;;  %2612 = vmatpush3.bf16.msra.mxu1 %v3252_v61 }
 0x35d   :  { %2585 = vmatprep.subr.bf16.mxu0 %v3174_v35  ;;  %2613 = vmatprep.subr.bf16.mxu1 %v2912_v40 }
 0x360   :  { %2587 = vmatpush1.bf16.msra.mxu0 %v3202_v45  ;;  %2615 = vmatpush3.bf16.msra.mxu1 %v3287_v10 }
 0x361   :  { %2589 = vmatprep.subr.bf16.mxu0 %v3205_v46  ;;  %2616 = vmatprep.subr.bf16.mxu1 %v2912_v40 }
 0x364   :  { %2591 = vmatpush1.bf16.msra.mxu0 %v3234_v55  ;;  %2618 = vmatpush3.bf16.msra.mxu1 %v3313_v20 }
 0x365   :  { %2593 = vmatprep.subr.bf16.mxu0 %v3237_v56  ;;  %2619 = vmatprep.subr.bf16.mxu1 %v2912_v40 }
 0x368   :  { %2595 = vmatpush1.bf16.msra.mxu0 %v3266_v1  ;;  %2621 = vmatpush3.bf16.msra.mxu1 %v3330_v24 }
 0x369   :  { %2597 = vmatprep.subr.bf16.mxu0 %v3272_v4  ;;  %2622 = vmatprep.subr.bf16.mxu1 %v2912_v40 }
 0x36c   :  { %2599 = vmatpush1.bf16.msra.mxu0 %v3298_v13  ;;  %2624 = vmatpush3.bf16.msra.mxu1 %v3343_v29 }
 0x36d   :  { %2601 = vmatprep.subr.bf16.mxu0 %v3304_v15  ;;  %2625 = vmatprep.subr.bf16.mxu1 %v2912_v40 }
 0x370   :  { %2603 = vmatpush1.bf16.msra.mxu0 %v3326_v23  ;;  %2627 = vmatpush3.bf16.msra.mxu1 %v3357_v32 }
 0x371   :  { %2629 = vmatprep.subr.bf16.mxu0 %v3100_v9  ;;  %2660 = vmatprep.subr.bf16.mxu1 %v2912_v40 }
 0x426   :  { %v973_v50 = vpop.f32.mrb[6].mxu0  ;;  %v1044_v19 = vpop.f32.mrb[14].mxu1 }
 0x427   :  { %v2802_v21 = vadd.f32 %v973_v50, %v3412_v0  ;;  %v975_v22 = vpop.f32.mrb[7].mxu0  ;;  %v2143_v28 = vpop.f32.mrb[15].mxu1  ;;  %v1062_v38 = vadd.f32 %v3421_v27, %v1044_v19 }
 0x428   :  { %v2803_v31 = vadd.f32 %v975_v22, %v3415_v11 }
 0x429   :  { %v1790_v30 = vmul.f32 -1.442695, %v2802_v21 }
 0x42a   :  { %v1791_v33 = vmul.f32 -1.442695, %v2803_v31 }
 0x42b   :  { %2861 = vpow2.f32 %v1790_v30 }
 0x42c   :  { %2863 = vpow2.f32 %v1791_v33 }
 0x435   :  { %v2862_v36 = vpop.eup %2861 }
 0x436   :  { %v1052_v43 = vadd.f32 1.0, %v2862_v36  ;;  %v2864_v37 = vpop.eup %2863 }
 0x437   :  { %v1059_v52 = vadd.f32 1.0, %v2864_v37 }
 0x438   :  { %2865 = vrcp.f32 %v1052_v43 }
 0x442   :  { %v2866_v42 = vpop.eup %2865 }
 0x443   :  { %v1063_v47 = vmul.f32 %v2866_v42, %v1062_v38 }
 0x445   :  { %v1064_v49 = vadd.f32 %v1063_v47, %v3400_v48 }
 0x447   :  { %2867 = vtanh.f32 %v1064_v49 }
 0x448   :  { %2869 = vrcp.f32 %v1059_v52 }
 0x451   :  { %v2868_v54 = vpop.eup %2867 }
 0x452   :  { %v1066_v39 = vsub.f32 %v3520_v16, %v2868_v54  ;;  %v2870_v44 = vpop.eup %2869 }
 0x454   :  { %v1067_v58 = vmul.f32 %v2870_v44, %v1066_v39 }
 0x456   :  { %v3568_v60 = vadd.f32 %v2868_v54, %v1067_v58 }
 0x458   :  { %1142 = vmatmul.mubr.f32.vlgmr.msra.gmra.mrb[8].mxu0 %v3568_v60  ;;  %1758 = vst [vmem:[%s3722_s5 + $0x18] sm:$0xff] %v3568_v60  ;;  %2177 = vmatmul.mubr.f32.vlgmr.msra.gmra.mrb[16].mxu1 %v3568_v60 }
 0x459   :  { %2631 = vmatpush1.bf16.msra.mxu0 %v3120_v17  ;;  %2662 = vmatpush3.bf16.msra.mxu1 %v3189_v41 }
 0x45a   :  { %2633 = vmatprep.subr.bf16.mxu0 %v3123_v18  ;;  %2663 = vmatprep.subr.bf16.mxu1 %v2912_v40 }
 0x45b   :  { %1311 = vmatprep.mubr.f32.mxu0 %v2911_v3  ;;  %2211 = vmatprep.mubr.msk.f32.mxu1 %vm2913_vm0, %v2911_v3 }
 0x45d   :  { %2635 = vmatpush1.bf16.msra.mxu0 %v3143_v25  ;;  %2665 = vmatpush3.bf16.msra.mxu1 %v3220_v51 }
 0x45e   :  { %2637 = vmatprep.subr.bf16.mxu0 %v3146_v26  ;;  %2666 = vmatprep.subr.bf16.mxu1 %v2912_v40 }
 0x461   :  { %2639 = vmatpush1.bf16.msra.mxu0 %v3171_v34  ;;  %2668 = vmatpush3.bf16.msra.mxu1 %v3252_v61 }
 0x462   :  { %2641 = vmatprep.subr.bf16.mxu0 %v3174_v35  ;;  %2669 = vmatprep.subr.bf16.mxu1 %v2912_v40 }
 0x465   :  { %2643 = vmatpush1.bf16.msra.mxu0 %v3202_v45  ;;  %2671 = vmatpush3.bf16.msra.mxu1 %v3287_v10 }
 0x466   :  { %2645 = vmatprep.subr.bf16.mxu0 %v3205_v46  ;;  %2672 = vmatprep.subr.bf16.mxu1 %v2912_v40 }
 0x469   :  { %2647 = vmatpush1.bf16.msra.mxu0 %v3234_v55  ;;  %2674 = vmatpush3.bf16.msra.mxu1 %v3313_v20 }
 0x46a   :  { %2649 = vmatprep.subr.bf16.mxu0 %v3237_v56  ;;  %2675 = vmatprep.subr.bf16.mxu1 %v2912_v40 }
 0x46d   :  { %2651 = vmatpush1.bf16.msra.mxu0 %v3266_v1  ;;  %2677 = vmatpush3.bf16.msra.mxu1 %v3330_v24 }
 0x46e   :  { %2653 = vmatprep.subr.bf16.mxu0 %v3272_v4  ;;  %2678 = vmatprep.subr.bf16.mxu1 %v2912_v40 }
 0x471   :  { %2655 = vmatpush1.bf16.msra.mxu0 %v3298_v13  ;;  %2680 = vmatpush3.bf16.msra.mxu1 %v3343_v29 }
 0x472   :  { %2657 = vmatprep.subr.bf16.mxu0 %v3304_v15  ;;  %2681 = vmatprep.subr.bf16.mxu1 %v2912_v40 }
 0x475   :  { %2659 = vmatpush1.bf16.msra.mxu0 %v3326_v23  ;;  %2683 = vmatpush3.bf16.msra.mxu1 %v3357_v32 }
 0x476   :  { %2685 = vmatprep.subr.bf16.mxu0 %v3100_v9  ;;  %2716 = vmatprep.subr.bf16.mxu1 %v2912_v40 }
 0x52b   :  { %v1143_v48 = vpop.f32.mrb[8].mxu0  ;;  %v1214_v63 = vpop.f32.mrb[16].mxu1 }
 0x52c   :  { %v2804_v2 = vadd.f32 %v1143_v48, %v3412_v0  ;;  %v1145_v5 = vpop.f32.mrb[9].mxu0  ;;  %v2178_v6 = vpop.f32.mrb[17].mxu1  ;;  %v1232_v19 = vadd.f32 %v3421_v27, %v1214_v63 }
 0x52d   :  { %v2805_v8 = vadd.f32 %v1145_v5, %v3415_v11 }
 0x52e   :  { %v1792_v7 = vmul.f32 -1.442695, %v2804_v2 }
 0x52f   :  { %v1793_v12 = vmul.f32 -1.442695, %v2805_v8 }
 0x530   :  { %2871 = vpow2.f32 %v1792_v7 }
 0x531   :  { %2873 = vpow2.f32 %v1793_v12 }
 0x53a   :  { %v2872_v14 = vpop.eup %2871 }
 0x53b   :  { %v1222_v16 = vadd.f32 1.0, %v2872_v14  ;;  %v2874_v50 = vpop.eup %2873 }
 0x53c   :  { %v1229_v30 = vadd.f32 1.0, %v2874_v50 }
 0x53d   :  { %2875 = vrcp.f32 %v1222_v16 }
 0x547   :  { %v2876_v21 = vpop.eup %2875 }
 0x548   :  { %v1233_v22 = vmul.f32 %v2876_v21, %v1232_v19 }
 0x54a   :  { %v1234_v28 = vadd.f32 %v1233_v22, %v3406_v57 }
 0x54c   :  { %2877 = vtanh.f32 %v1234_v28 }
 0x54d   :  { %2879 = vrcp.f32 %v1229_v30 }
 0x556   :  { %v2878_v31 = vpop.eup %2877 }
 0x557   :  { %v1236_v33 = vsub.f32 %v3568_v60, %v2878_v31  ;;  %v2880_v36 = vpop.eup %2879 }
 0x559   :  { %v1237_v43 = vmul.f32 %v2880_v36, %v1236_v33 }
 0x55b   :  { %v3616_v37 = vadd.f32 %v2878_v31, %v1237_v43 }
 0x55d   :  { %1312 = vmatmul.mubr.f32.vlgmr.msra.gmra.mrb[10].mxu0 %v3616_v37  ;;  %1760 = vst [vmem:[%s3722_s5 + $0x20] sm:$0xff] %v3616_v37  ;;  %2212 = vmatmul.mubr.f32.vlgmr.msra.gmra.mrb[18].mxu1 %v3616_v37 }
 0x55e   :  { %2687 = vmatpush1.bf16.msra.mxu0 %v3120_v17  ;;  %2718 = vmatpush3.bf16.msra.mxu1 %v3189_v41 }
 0x55f   :  { %2689 = vmatprep.subr.bf16.mxu0 %v3123_v18  ;;  %2719 = vmatprep.subr.bf16.mxu1 %v2912_v40 }
 0x560   :  { %1481 = vmatprep.mubr.f32.mxu0 %v2911_v3  ;;  %2246 = vmatprep.mubr.msk.f32.mxu1 %vm2913_vm0, %v2911_v3 }
 0x562   :  { %2691 = vmatpush1.bf16.msra.mxu0 %v3143_v25  ;;  %2721 = vmatpush3.bf16.msra.mxu1 %v3220_v51 }
 0x563   :  { %2693 = vmatprep.subr.bf16.mxu0 %v3146_v26  ;;  %2722 = vmatprep.subr.bf16.mxu1 %v2912_v40 }
 0x566   :  { %2695 = vmatpush1.bf16.msra.mxu0 %v3171_v34  ;;  %2724 = vmatpush3.bf16.msra.mxu1 %v3252_v61 }
 0x567   :  { %2697 = vmatprep.subr.bf16.mxu0 %v3174_v35  ;;  %2725 = vmatprep.subr.bf16.mxu1 %v2912_v40 }
 0x56a   :  { %2699 = vmatpush1.bf16.msra.mxu0 %v3202_v45  ;;  %2727 = vmatpush3.bf16.msra.mxu1 %v3287_v10 }
 0x56b   :  { %2701 = vmatprep.subr.bf16.mxu0 %v3205_v46  ;;  %2728 = vmatprep.subr.bf16.mxu1 %v2912_v40 }
 0x56e   :  { %2703 = vmatpush1.bf16.msra.mxu0 %v3234_v55  ;;  %2730 = vmatpush3.bf16.msra.mxu1 %v3313_v20 }
 0x56f   :  { %2705 = vmatprep.subr.bf16.mxu0 %v3237_v56  ;;  %2731 = vmatprep.subr.bf16.mxu1 %v2912_v40 }
 0x572   :  { %2707 = vmatpush1.bf16.msra.mxu0 %v3266_v1  ;;  %2733 = vmatpush3.bf16.msra.mxu1 %v3330_v24 }
 0x573   :  { %2709 = vmatprep.subr.bf16.mxu0 %v3272_v4  ;;  %2734 = vmatprep.subr.bf16.mxu1 %v2912_v40 }
 0x576   :  { %2711 = vmatpush1.bf16.msra.mxu0 %v3298_v13  ;;  %2736 = vmatpush3.bf16.msra.mxu1 %v3343_v29 }
 0x577   :  { %2713 = vmatprep.subr.bf16.mxu0 %v3304_v15  ;;  %2737 = vmatprep.subr.bf16.mxu1 %v2912_v40 }
 0x57a   :  { %2715 = vmatpush1.bf16.msra.mxu0 %v3326_v23  ;;  %2739 = vmatpush3.bf16.msra.mxu1 %v3357_v32 }
 0x57b   :  { %2741 = vmatprep.subr.bf16.mxu0 %v3100_v9  ;;  %2772 = vmatprep.subr.bf16.mxu1 %v2912_v40 }
 0x630   :  { %v1313_v57 = vpop.f32.mrb[10].mxu0  ;;  %v1384_v38 = vpop.f32.mrb[18].mxu1 }
 0x631   :  { %v2806_v42 = vadd.f32 %v1313_v57, %v3412_v0  ;;  %v1315_v47 = vpop.f32.mrb[11].mxu0  ;;  %v2213_v49 = vpop.f32.mrb[19].mxu1  ;;  %v1402_v9 = vadd.f32 %v3421_v27, %v1384_v38 }
 0x632   :  { %v2807_v54 = vadd.f32 %v1315_v47, %v3415_v11 }
 0x633   :  { %v1794_v52 = vmul.f32 -1.442695, %v2806_v42 }
 0x634   :  { %v1795_v39 = vmul.f32 -1.442695, %v2807_v54 }
 0x635   :  { %2881 = vpow2.f32 %v1794_v52 }
 0x636   :  { %2883 = vpow2.f32 %v1795_v39 }
 0x63f   :  { %v2882_v44 = vpop.eup %2881 }
 0x640   :  { %v1392_v58 = vadd.f32 1.0, %v2882_v44  ;;  %v2884_v60 = vpop.eup %2883 }
 0x641   :  { %v1399_v5 = vadd.f32 1.0, %v2884_v60 }
 0x642   :  { %2885 = vrcp.f32 %v1392_v58 }
 0x64c   :  { %v2886_v48 = vpop.eup %2885 }
 0x64d   :  { %v1403_v63 = vmul.f32 %v2886_v48, %v1402_v9 }
 0x64f   :  { %v1404_v2 = vadd.f32 %v1403_v63, %v3404_v53 }
 0x651   :  { %2887 = vtanh.f32 %v1404_v2 }
 0x652   :  { %2889 = vrcp.f32 %v1399_v5 }
 0x65b   :  { %v2888_v6 = vpop.eup %2887 }
 0x65c   :  { %v1406_v7 = vsub.f32 %v3616_v37, %v2888_v6  ;;  %v2890_v8 = vpop.eup %2889 }
 0x65e   :  { %v1407_v12 = vmul.f32 %v2890_v8, %v1406_v7 }
 0x660   :  { %v1408_v14 = vadd.f32 %v2888_v6, %v1407_v12 }
 0x662   :  { %1482 = vmatmul.mubr.f32.vlgmr.msra.gmra.mrb[12].mxu0 %v1408_v14  ;;  %1762 = vst [vmem:[%s3722_s5 + $0x28] sm:$0xff] %v1408_v14  ;;  %2247 = vmatmul.mubr.f32.vlgmr.msra.gmra.mrb[20].mxu1 %v1408_v14 }
 0x663   :  { %2743 = vmatpush1.bf16.msra.mxu0 %v3120_v17  ;;  %2774 = vmatpush3.bf16.msra.mxu1 %v3189_v41 }
 0x664   :  { %2745 = vmatprep.subr.bf16.mxu0 %v3123_v18  ;;  %2775 = vmatprep.subr.bf16.mxu1 %v2912_v40 }
 0x665   :  { %1651 = vmatprep.mubr.f32.mxu0 %v2911_v3  ;;  %2281 = vmatprep.mubr.msk.f32.mxu1 %vm2913_vm0, %v2911_v3 }
 0x667   :  { %2747 = vmatpush1.bf16.msra.mxu0 %v3143_v25  ;;  %2777 = vmatpush3.bf16.msra.mxu1 %v3220_v51 }
 0x668   :  { %2749 = vmatprep.subr.bf16.mxu0 %v3146_v26  ;;  %2778 = vmatprep.subr.bf16.mxu1 %v2912_v40 }
 0x66b   :  { %2751 = vmatpush1.bf16.msra.mxu0 %v3171_v34  ;;  %2780 = vmatpush3.bf16.msra.mxu1 %v3252_v61 }
 0x66c   :  { %2753 = vmatprep.subr.bf16.mxu0 %v3174_v35  ;;  %2781 = vmatprep.subr.bf16.mxu1 %v2912_v40 }
 0x66f   :  { %2755 = vmatpush1.bf16.msra.mxu0 %v3202_v45  ;;  %2783 = vmatpush3.bf16.msra.mxu1 %v3287_v10 }
 0x670   :  { %2757 = vmatprep.subr.bf16.mxu0 %v3205_v46  ;;  %2784 = vmatprep.subr.bf16.mxu1 %v2912_v40 }
 0x673   :  { %2759 = vmatpush1.bf16.msra.mxu0 %v3234_v55  ;;  %2786 = vmatpush3.bf16.msra.mxu1 %v3313_v20 }
 0x674   :  { %2761 = vmatprep.subr.bf16.mxu0 %v3237_v56  ;;  %2787 = vmatprep.subr.bf16.mxu1 %v2912_v40 }
 0x677   :  { %2763 = vmatpush1.bf16.msra.mxu0 %v3266_v1  ;;  %2789 = vmatpush3.bf16.msra.mxu1 %v3330_v24 }
 0x678   :  { %2765 = vmatprep.subr.bf16.mxu0 %v3272_v4  ;;  %2790 = vmatprep.subr.bf16.mxu1 %v2912_v40 }
 0x67b   :  { %2767 = vmatpush1.bf16.msra.mxu0 %v3298_v13  ;;  %2792 = vmatpush3.bf16.msra.mxu1 %v3343_v29 }
 0x67c   :  { %2769 = vmatprep.subr.bf16.mxu0 %v3304_v15  ;;  %2793 = vmatprep.subr.bf16.mxu1 %v2912_v40 }
 0x67f   :  { %2771 = vmatpush1.bf16.msra.mxu0 %v3326_v23  ;;  %2795 = vmatpush3.bf16.msra.mxu1 %v3357_v32 }
 0x735   :  { %v1483_v3 = vpop.f32.mrb[12].mxu0  ;;  %v1554_v17 = vpop.f32.mrb[20].mxu1 }
 0x736   :  { %v2808_v18 = vadd.f32 %v1483_v3, %v3412_v0  ;;  %v1485_v25 = vpop.f32.mrb[13].mxu0  ;;  %v2248_v26 = vpop.f32.mrb[21].mxu1  ;;  %v1572_v51 = vadd.f32 %v3421_v27, %v1554_v17 }
 0x737   :  { %v2809_v35 = vadd.f32 %v1485_v25, %v3415_v11 }
 0x738   :  { %v1796_v34 = vmul.f32 -1.442695, %v2808_v18 }
 0x739   :  { %v1797_v41 = vmul.f32 -1.442695, %v2809_v35 }
 0x73a   :  { %2891 = vpow2.f32 %v1796_v34 }
 0x73b   :  { %2893 = vpow2.f32 %v1797_v41 }
 0x744   :  { %v2892_v45 = vpop.eup %2891 }
 0x745   :  { %v1562_v46 = vadd.f32 1.0, %v2892_v45  ;;  %v2894_v40 = vpop.eup %2893 }
 0x746   :  { %v1569_v1 = vadd.f32 1.0, %v2894_v40 }
 0x747   :  { %2895 = vrcp.f32 %v1562_v46 }
 0x751   :  { %v2896_v55 = vpop.eup %2895 }
 0x752   :  { %v1573_v56 = vmul.f32 %v2896_v55, %v1572_v51 }
 0x754   :  { %v1574_v61 = vadd.f32 %v1573_v56, %v3410_v62 }
 0x756   :  { %2897 = vtanh.f32 %v1574_v61 }
 0x757   :  { %2899 = vrcp.f32 %v1569_v1 }
 0x760   :  { %v2898_v4 = vpop.eup %2897 }
 0x761   :  { %v1576_v10 = vsub.f32 %v1408_v14, %v2898_v4  ;;  %v2900_v13 = vpop.eup %2899 }
 0x763   :  { %v1577_v15 = vmul.f32 %v2900_v13, %v1576_v10 }
 0x765   :  { %v1578_v20 = vadd.f32 %v2898_v4, %v1577_v15 }
 0x767   :  { %1652 = vmatmul.mubr.f32.vlgmr.msra.gmra.mrb[14].mxu0 %v1578_v20  ;;  %1764 = vst [vmem:[%s3722_s5 + $0x30] sm:$0xff] %v1578_v20  ;;  %2282 = vmatmul.mubr.f32.vlgmr.msra.gmra.mrb[22].mxu1 %v1578_v20 }
 0x83a   :  { %v1653_v23 = vpop.f32.mrb[14].mxu0  ;;  %v1724_v24 = vpop.f32.mrb[22].mxu1 }
 0x83b   :  { %v2810_v29 = vadd.f32 %v1653_v23, %v3412_v0  ;;  %v1655_v32 = vpop.f32.mrb[15].mxu0  ;;  %v2283_v53 = vpop.f32.mrb[23].mxu1  ;;  %v1742_v28 = vadd.f32 %v3421_v27, %v1724_v24 }
 0x83c   :  { %v2811_v16 = vadd.f32 %v1655_v32, %v3415_v11 }
 0x83d   :  { %v1798_v62 = vmul.f32 -1.442695, %v2810_v29 }
 0x83e   :  { %v1799_v50 = vmul.f32 -1.442695, %v2811_v16 }
 0x83f   :  { %2901 = vpow2.f32 %v1798_v62 }
 0x840   :  { %2903 = vpow2.f32 %v1799_v50 }
 0x849   :  { %v2902_v19 = vpop.eup %2901 }
 0x84a   :  { %v1732_v21 = vadd.f32 1.0, %v2902_v19  ;;  %v2904_v22 = vpop.eup %2903 }
 0x84b   :  { %v1739_v36 = vadd.f32 1.0, %v2904_v22 }
 0x84c   :  { %2905 = vrcp.f32 %v1732_v21 }
 0x856   :  { %v2906_v30 = vpop.eup %2905 }
 0x857   :  { %v1743_v31 = vmul.f32 %v2906_v30, %v1742_v28 }
 0x859   :  { %v1744_v33 = vadd.f32 %v1743_v31, %v3408_v59 }
 0x85b   :  { %2907 = vtanh.f32 %v1744_v33 }
 0x85c   :  { %2909 = vrcp.f32 %v1739_v36 }
 0x865   :  { %v2908_v0 = vpop.eup %2907 }
 0x866   :  { %v1746_v43 = vsub.f32 %v1578_v20, %v2908_v0  ;;  %v2910_v37 = vpop.eup %2909 }
 0x868   :  { %v1747_v57 = vmul.f32 %v2910_v37, %v1746_v43 }
 0x86a   :  { %v1748_v11 = vadd.f32 %v2908_v0, %v1747_v57 }
 0x86c   :  { %1766 = vst [vmem:[%s3722_s5 + $0x38] sm:$0xff] %v1748_v11  ;;  %1767 = vst [vmem:[%s3723_s6] sm:$0xff] %v1748_v11 }

</bundles_post_ra>
